<compile_context>
chip_gen: v6e
topology: v6e:2x2x1
jax: 0.10.0
libtpu: 0.0.40
codegen_flags: <defaults>
</compile_context>

<pallas_src>
import jax
import jax.numpy as jnp
from jax import lax
from jax.experimental import pallas as pl
from jax.experimental.pallas import tpu as pltpu


GATE_PAD = 128   # lanes per LSTM gate (one full vreg lane width)
L1_PAD = 128     # lane-dense first LSD layer width
OUT_PAD = 128    # lane-dense output width


def rnn_kernel(x_ref, wih_ref, whh_ref, b_ref, w1_ref, b1_ref, w2_ref, b2_ref,
               out_ref, xg_ref, h_ref, c_ref):
    """One time-chunk of the LSTM recurrence (+ LSD tail on the last chunk).

    x_ref   : (Tc*B, D)      bf16, time-major rows (t-local major, batch minor)
    wih_ref : (D, 4*GP)      bf16, gate order (i, f, o, g), each gate padded to GP lanes
    whh_ref : (GP, 4*GP)     bf16, rows H.. are zero
    b_ref   : (1, 4*GP)      f32, b_ih + b_hh, padded entries zero
    w1_ref  : (GP, L1_PAD)   bf16   b1_ref : (1, L1_PAD) f32
    w2_ref  : (L1_PAD, OUT_PAD) bf16   b2_ref : (1, OUT_PAD) f32
    out_ref : (B, OUT_PAD)   f32 (written only on the last grid step)
    xg_ref  : (Tc*B, 4*GP)   f32 VMEM scratch (hoisted input projection)
    h_ref, c_ref : (B, GP)   f32 VMEM scratch, carried across grid steps
    """
    tchunk = pl.program_id(0)
    B = out_ref.shape[0]
    GP = h_ref.shape[1]
    Tc = x_ref.shape[0] // B

    @pl.when(tchunk == 0)
    def _init():
        h_ref[...] = jnp.zeros_like(h_ref)
        c_ref[...] = jnp.zeros_like(c_ref)

    # Hoisted per-chunk input projection: one (Tc*B, D) @ (D, 4*GP) bf16 matmul
    # (f32 accumulate) + bias, written to VMEM scratch so it does not stay live
    # in vregs across the recurrence.
    xg_ref[...] = (
        jnp.dot(x_ref[...], wih_ref[...], preferred_element_type=jnp.float32)
        + b_ref[...])

    whh = whh_ref[...]  # read once; held across the time loop

    def step(tl, carry):
        h, c = carry
        start = pl.multiple_of(tl * B, B)
        gates = xg_ref[pl.ds(start, B), :] + jnp.dot(
            h.astype(jnp.bfloat16), whh, preferred_element_type=jnp.float32)
        # Gate order (i, f, o, g), each a full 128-lane block: one sigmoid over
        # the first 3*GP lanes, one tanh over the last GP lanes; every slice is
        # lane-aligned (no XLU rotates on the serial chain).
        sig = jax.nn.sigmoid(gates[:, 0:3 * GP])
        i_g = sig[:, 0 * GP:1 * GP]
        f_g = sig[:, 1 * GP:2 * GP]
        o_g = sig[:, 2 * GP:3 * GP]
        g_g = jnp.tanh(gates[:, 3 * GP:4 * GP])
        c = f_g * c + i_g * g_g
        h = o_g * jnp.tanh(c)
        return h, c

    h, c = lax.fori_loop(0, Tc, step, (h_ref[...], c_ref[...]),
                         unroll=min(8, Tc))
    h_ref[...] = h
    c_ref[...] = c

    @pl.when(tchunk == pl.num_programs(0) - 1)
    def _tail():
        # LSD layer 0: Linear -> SiLU (dropout = identity).  Padded columns are
        # SiLU(0) = 0 so they stay inert through the next matmul.
        h1 = jax.nn.silu(
            jnp.dot(h.astype(jnp.bfloat16), w1_ref[...],
                    preferred_element_type=jnp.float32) + b1_ref[...])
        # LSD layer 1 (last, dropout p=0.0); output padded to 128 lanes for an
        # unmasked lane-dense store.
        h2 = jax.nn.silu(
            jnp.dot(h1.astype(jnp.bfloat16), w2_ref[...],
                    preferred_element_type=jnp.float32) + b2_ref[...])
        out_ref[...] = h2.astype(out_ref.dtype)


def prepare_kernel_params(w_ih, w_hh, b_ih, b_hh, w1, b1, w2, b2):
    """Convert torch-layout LSTM/Linear params to the kernel layout.

    - transpose to (in, out) for x @ W matmuls
    - reorder gate blocks (i, f, g, o) -> (i, f, o, g)
    - zero-pad every gate to GATE_PAD (=128) lanes; pad W_hh rows to GATE_PAD
    - combine the two LSTM biases
    - zero-pad the LSD layers to L1_PAD / OUT_PAD columns (lane-dense)
    - cast matmul weights to bf16 (biases stay f32)
    """
    H = w_hh.shape[1]
    assert H <= GATE_PAD, "hidden size must fit in one 128-lane gate block"
    GP = GATE_PAD
    src = (0, 1, 3, 2)  # target gate slot s <- torch gate block src[s] (i,f,g,o)

    def pad_gates(w_t):  # w_t: (in_dim, 4H) torch gate-column order
        out = jnp.zeros((w_t.shape[0], 4 * GP), w_t.dtype)
        for s, g in enumerate(src):
            out = out.at[:, s * GP:s * GP + H].set(w_t[:, g * H:(g + 1) * H])
        return out

    wih_p = pad_gates(w_ih.T)                                   # (D, 4GP)
    whh_p = jnp.zeros((GP, 4 * GP), w_hh.dtype).at[:H, :].set(
        pad_gates(w_hh.T))                                      # (GP, 4GP)

    b_t = b_ih + b_hh
    b_p = jnp.zeros((4 * GP,), b_t.dtype)
    for s, g in enumerate(src):
        b_p = b_p.at[s * GP:s * GP + H].set(b_t[g * H:(g + 1) * H])
    b_p = b_p.reshape(1, 4 * GP)

    L1, L2 = w2.shape
    w1_p = jnp.zeros((GP, L1_PAD), w1.dtype).at[:H, :L1].set(w1)
    b1_p = jnp.zeros((1, L1_PAD), b1.dtype).at[0, :L1].set(b1)
    w2_p = jnp.zeros((L1_PAD, OUT_PAD), w2.dtype).at[:L1, :L2].set(w2)
    b2_p = jnp.zeros((1, OUT_PAD), b2.dtype).at[0, :L2].set(b2)

    return (wih_p.astype(jnp.bfloat16), whh_p.astype(jnp.bfloat16),
            b_p.astype(jnp.float32),
            w1_p.astype(jnp.bfloat16), b1_p.astype(jnp.float32),
            w2_p.astype(jnp.bfloat16), b2_p.astype(jnp.float32))


def rnn_forward(x_btd, kparams, n_classes):
    """x_btd: (B, T, D_in) batch-first, like torch's padded input."""
    B, T, D = x_btd.shape
    wih, whh, b, w1, b1, w2, b2 = kparams
    GP = whh.shape[0]

    # Pad batch to 16 (bf16 sublane tile) so MXU rows / vregs are unmasked.
    B_pad = max(16, ((B + 15) // 16) * 16)
    x_tbd = jnp.transpose(x_btd, (1, 0, 2))               # time-major (T, B, D)
    if B_pad != B:
        x_tbd = jnp.pad(x_tbd, ((0, 0), (0, B_pad - B), (0, 0)))
    x_flat = x_tbd.reshape(T * B_pad, D).astype(jnp.bfloat16)

    # Time-chunk size: 8 steps per grid iteration (keeps the x block sublane
    # count a multiple of the tile) -> DMA of chunk t+1 overlaps chunk t's
    # recurrence, VMEM footprint is O(Tc) instead of O(T).
    Tc = 8 if T % 8 == 0 else T
    n_chunks = T // Tc

    # Explicit VMEM budget (review item for v7x's 64 MiB VMEM): buffers + 2x margin.
    vmem_bytes = (
        2 * (Tc * B_pad * D * 2)                 # double-buffered x chunk (bf16)
        + Tc * B_pad * 4 * GP * 4                # xg scratch (f32)
        + 2 * (B_pad * GP * 4)                   # h, c scratch
        + B_pad * OUT_PAD * 4                    # output block
        + sum(int(w.size) * w.dtype.itemsize for w in kparams))
    vmem_limit = int(min(64 * 1024 * 1024, max(16 * 1024 * 1024, 2 * vmem_bytes)))

    out = pl.pallas_call(
        rnn_kernel,
        out_shape=jax.ShapeDtypeStruct((B_pad, OUT_PAD), jnp.float32),
        grid_spec=pltpu.PrefetchScalarGridSpec(
            num_scalar_prefetch=0,
            grid=(n_chunks,),
            in_specs=[
                pl.BlockSpec((Tc * B_pad, D), lambda t: (t, 0)),       # x chunk
                pl.BlockSpec(wih.shape, lambda t: (0, 0)),
                pl.BlockSpec(whh.shape, lambda t: (0, 0)),
                pl.BlockSpec(b.shape, lambda t: (0, 0)),
                pl.BlockSpec(w1.shape, lambda t: (0, 0)),
                pl.BlockSpec(b1.shape, lambda t: (0, 0)),
                pl.BlockSpec(w2.shape, lambda t: (0, 0)),
                pl.BlockSpec(b2.shape, lambda t: (0, 0)),
            ],
            out_specs=pl.BlockSpec((B_pad, OUT_PAD), lambda t: (0, 0)),
            scratch_shapes=[
                pltpu.VMEM((Tc * B_pad, 4 * GP), jnp.float32),  # xg (chunk proj)
                pltpu.VMEM((B_pad, GP), jnp.float32),           # h carry
                pltpu.VMEM((B_pad, GP), jnp.float32),           # c carry
            ]),
        compiler_params=pltpu.CompilerParams(
            dimension_semantics=("arbitrary",),
            vmem_limit_bytes=vmem_limit),
    )(x_flat, wih, whh, b, w1, b1, w2, b2)
    return out[:B, :n_classes]


def reference_forward(x_btd, torch_params):
    """Pure-JAX f32 reference with torch's original layout / gate order."""
    w_ih, w_hh, b_ih, b_hh, w1, b1, w2, b2 = torch_params
    B, T, D = x_btd.shape
    H = w_hh.shape[1]
    wih_t, whh_t = w_ih.T, w_hh.T
    b = (b_ih + b_hh).reshape(1, 4 * H)
    h = jnp.zeros((B, H), jnp.float32)
    c = jnp.zeros((B, H), jnp.float32)
    for t in range(T):
        gates = x_btd[:, t, :] @ wih_t + h @ whh_t + b
        i_g = jax.nn.sigmoid(gates[:, 0 * H:1 * H])
        f_g = jax.nn.sigmoid(gates[:, 1 * H:2 * H])
        g_g = jnp.tanh(gates[:, 2 * H:3 * H])
        o_g = jax.nn.sigmoid(gates[:, 3 * H:4 * H])
        c = f_g * c + i_g * g_g
        h = o_g * jnp.tanh(c)
    h1 = jax.nn.silu(h @ w1 + b1.reshape(1, -1))
    return jax.nn.silu(h1 @ w2 + b2.reshape(1, -1))


if __name__ == "__main__":
    # Small config consistent with the module: input_size=16, hidden_size=32,
    # num_layers=1, unidirectional; linear_sizes=[64, 8]; batch=2, seq=16
    # (two time chunks so the h/c grid-carry path is exercised).
    B, T, D_IN, H = 2, 16, 16, 32
    L1, L2 = 64, 8

    key = jax.random.PRNGKey(0)
    ks = jax.random.split(key, 10)
    s = 1.0 / jnp.sqrt(H)  # torch-style uniform init scale

    # LSTM params in torch layout: W_ih (4H, D_in), W_hh (4H, H), biases (4H,).
    w_ih = jax.random.uniform(ks[0], (4 * H, D_IN), jnp.float32, -s, s)
    w_hh = jax.random.uniform(ks[1], (4 * H, H), jnp.float32, -s, s)
    b_ih = jax.random.uniform(ks[2], (4 * H,), jnp.float32, -s, s)
    b_hh = jax.random.uniform(ks[3], (4 * H,), jnp.float32, -s, s)

    # LSD (Linear) params stored as (in, out) for x @ W.
    w1 = jax.random.uniform(ks[4], (H, L1), jnp.float32, -s, s)
    b1 = jax.random.uniform(ks[5], (L1,), jnp.float32, -s, s)
    w2 = jax.random.uniform(ks[6], (L1, L2), jnp.float32, -s, s)
    b2 = jax.random.uniform(ks[7], (L2,), jnp.float32, -s, s)

    torch_params = (w_ih, w_hh, b_ih, b_hh, w1, b1, w2, b2)
    kparams = prepare_kernel_params(*torch_params)

    # Padded batch-first input (pad_sequence already applied conceptually).
    x = jax.random.normal(ks[8], (B, T, D_IN), jnp.float32)

    out = rnn_forward(x, kparams, n_classes=L2)
    out = jax.block_until_ready(out)

    ref = reference_forward(x, torch_params)
    assert out.shape == (B, L2)
    # bf16 MXU operands -> tolerance loosened vs the f32 reference.
    assert jnp.allclose(out, ref, atol=5e-2, rtol=5e-2), "mismatch vs reference"

    print("KERNEL_OK")
</pallas_src>

<mosaic_0001>
module attributes {stable_mosaic.version = 11 : i64} {
  func.func @rnn_kernel(%arg0: i32, %arg1: memref<128x16xbf16, #tpu.memory_space<vmem>>, %arg2: memref<16x512xbf16, #tpu.memory_space<vmem>>, %arg3: memref<128x512xbf16, #tpu.memory_space<vmem>>, %arg4: memref<1x512xf32, #tpu.memory_space<vmem>>, %arg5: memref<128x128xbf16, #tpu.memory_space<vmem>>, %arg6: memref<1x128xf32, #tpu.memory_space<vmem>>, %arg7: memref<128x128xbf16, #tpu.memory_space<vmem>>, %arg8: memref<1x128xf32, #tpu.memory_space<vmem>>, %arg9: memref<16x128xf32, #tpu.memory_space<vmem>>, %arg10: memref<128x512xf32, #tpu.memory_space<vmem>>, %arg11: memref<16x128xf32, #tpu.memory_space<vmem>>, %arg12: memref<16x128xf32, #tpu.memory_space<vmem>>) attributes {dimension_semantics = [#tpu.dimension_semantics<arbitrary>], iteration_bounds = array<i64: 2>, scalar_prefetch = 0 : i64, scratch_operands = 3 : i64, tpu.core_type = #tpu.core_type<tc>, window_params = [{transform_indices = @transform_0, window_bounds = array<i64: 128, 16>}, {pipeline_mode = #tpu.pipeline_mode<synchronous>, transform_indices = @transform_1, window_bounds = array<i64: 16, 512>}, {pipeline_mode = #tpu.pipeline_mode<synchronous>, transform_indices = @transform_2, window_bounds = array<i64: 128, 512>}, {pipeline_mode = #tpu.pipeline_mode<synchronous>, transform_indices = @transform_3, window_bounds = array<i64: 1, 512>}, {pipeline_mode = #tpu.pipeline_mode<synchronous>, transform_indices = @transform_4, window_bounds = array<i64: 128, 128>}, {pipeline_mode = #tpu.pipeline_mode<synchronous>, transform_indices = @transform_5, window_bounds = array<i64: 1, 128>}, {pipeline_mode = #tpu.pipeline_mode<synchronous>, transform_indices = @transform_6, window_bounds = array<i64: 128, 128>}, {pipeline_mode = #tpu.pipeline_mode<synchronous>, transform_indices = @transform_7, window_bounds = array<i64: 1, 128>}, {pipeline_mode = #tpu.pipeline_mode<synchronous>, transform_indices = @transform_8, window_bounds = array<i64: 16, 128>}]} {
    %c0_i32 = arith.constant 0 : i32
    %0 = arith.cmpi eq, %arg0, %c0_i32 : i32
    %1 = arith.extui %0 : i1 to i32
    %c0_i32_0 = arith.constant 0 : i32
    %2 = arith.cmpi ne, %1, %c0_i32_0 : i32
    scf.if %2 {
      %cst_52 = arith.constant 0.000000e+00 : f32
      %202 = vector.broadcast %cst_52 : f32 to vector<16x128xf32>
      %c0_53 = arith.constant 0 : index
      %c0_54 = arith.constant 0 : index
      %203 = vector.load %arg11[%c0_53, %c0_54] : memref<16x128xf32, #tpu.memory_space<vmem>>, vector<16x128xf32>
      tpu.vector_store %arg11[%c0_53, %c0_54], %202 {strides = array<i32>} : memref<16x128xf32, #tpu.memory_space<vmem>>, vector<16x128xf32>,
      %cst_55 = arith.constant 0.000000e+00 : f32
      %204 = vector.broadcast %cst_55 : f32 to vector<16x128xf32>
      %c0_56 = arith.constant 0 : index
      %c0_57 = arith.constant 0 : index
      %205 = vector.load %arg12[%c0_56, %c0_57] : memref<16x128xf32, #tpu.memory_space<vmem>>, vector<16x128xf32>
      tpu.vector_store %arg12[%c0_56, %c0_57], %204 {strides = array<i32>} : memref<16x128xf32, #tpu.memory_space<vmem>>, vector<16x128xf32>,
    } else {
    }
    %c0 = arith.constant 0 : index
    %c0_1 = arith.constant 0 : index
    %3 = vector.load %arg1[%c0, %c0_1] : memref<128x16xbf16, #tpu.memory_space<vmem>>, vector<128x16xbf16>
    %c0_2 = arith.constant 0 : index
    %c0_3 = arith.constant 0 : index
    %4 = vector.load %arg2[%c0_2, %c0_3] : memref<16x512xbf16, #tpu.memory_space<vmem>>, vector<16x512xbf16>
    %cst = arith.constant dense<0.000000e+00> : vector<128x512xf32>
    %5 = tpu.matmul %3, %4, %cst {dimension_numbers = #tpu.dot_dimension_numbers<[1], [0], [0], [1], [0, 0, 1, 1], [], []>} : vector<128x16xbf16>, vector<16x512xbf16>, vector<128x512xf32> -> vector<128x512xf32>
    %c0_4 = arith.constant 0 : index
    %c0_5 = arith.constant 0 : index
    %6 = vector.load %arg4[%c0_4, %c0_5] : memref<1x512xf32, #tpu.memory_space<vmem>>, vector<1x512xf32>
    %7 = vector.broadcast %6 : vector<1x512xf32> to vector<128x512xf32>
    %8 = arith.addf %5, %7 : vector<128x512xf32>
    %c0_6 = arith.constant 0 : index
    %c0_7 = arith.constant 0 : index
    %9 = vector.load %arg10[%c0_6, %c0_7] : memref<128x512xf32, #tpu.memory_space<vmem>>, vector<128x512xf32>
    tpu.vector_store %arg10[%c0_6, %c0_7], %8 {strides = array<i32>} : memref<128x512xf32, #tpu.memory_space<vmem>>, vector<128x512xf32>,
    %c0_8 = arith.constant 0 : index
    %c0_9 = arith.constant 0 : index
    %10 = vector.load %arg3[%c0_8, %c0_9] : memref<128x512xbf16, #tpu.memory_space<vmem>>, vector<128x512xbf16>
    %c0_10 = arith.constant 0 : index
    %c0_11 = arith.constant 0 : index
    %11 = vector.load %arg11[%c0_10, %c0_11] : memref<16x128xf32, #tpu.memory_space<vmem>>, vector<16x128xf32>
    %c0_12 = arith.constant 0 : index
    %c0_13 = arith.constant 0 : index
    %12 = vector.load %arg12[%c0_12, %c0_13] : memref<16x128xf32, #tpu.memory_space<vmem>>, vector<16x128xf32>
    %c0_i32_14 = arith.constant 0 : i32
    %c16_i32 = arith.constant 16 : i32
    %13 = arith.muli %c0_i32_14, %c16_i32 : i32
    %14 = tpu.assume_multiple %13, 16 : i32
    %15 = arith.index_cast %14 : i32 to index
    %c0_15 = arith.constant 0 : index
    %16 = vector.load %arg10[%15, %c0_15] : memref<128x512xf32, #tpu.memory_space<vmem>>, vector<16x512xf32>
    %17 = arith.truncf %11 : vector<16x128xf32> to vector<16x128xbf16>
    %cst_16 = arith.constant dense<0.000000e+00> : vector<16x512xf32>
    %18 = tpu.matmul %17, %10, %cst_16 {dimension_numbers = #tpu.dot_dimension_numbers<[1], [0], [0], [1], [0, 0, 1, 1], [], []>} : vector<16x128xbf16>, vector<128x512xbf16>, vector<16x512xf32> -> vector<16x512xf32>
    %19 = arith.addf %16, %18 : vector<16x512xf32>
    %20 = vector.extract_strided_slice %19 {offsets = [0, 0], sizes = [16, 384], strides = [1, 1]} : vector<16x512xf32> to vector<16x384xf32>
    %21 = arith.negf %20 : vector<16x384xf32>
    %22 = math.exp %21 : vector<16x384xf32>
    %cst_17 = arith.constant 1.000000e+00 : f32
    %23 = vector.broadcast %cst_17 : f32 to vector<16x384xf32>
    %24 = arith.addf %23, %22 : vector<16x384xf32>
    %25 = arith.divf %23, %24 : vector<16x384xf32>
    %26 = vector.extract_strided_slice %25 {offsets = [0, 0], sizes = [16, 128], strides = [1, 1]} : vector<16x384xf32> to vector<16x128xf32>
    %27 = vector.extract_strided_slice %25 {offsets = [0, 128], sizes = [16, 128], strides = [1, 1]} : vector<16x384xf32> to vector<16x128xf32>
    %28 = vector.extract_strided_slice %25 {offsets = [0, 256], sizes = [16, 128], strides = [1, 1]} : vector<16x384xf32> to vector<16x128xf32>
    %29 = vector.extract_strided_slice %19 {offsets = [0, 384], sizes = [16, 128], strides = [1, 1]} : vector<16x512xf32> to vector<16x128xf32>
    %30 = math.tanh %29 : vector<16x128xf32>
    %31 = arith.mulf %27, %12 : vector<16x128xf32>
    %32 = arith.mulf %26, %30 : vector<16x128xf32>
    %33 = arith.addf %31, %32 : vector<16x128xf32>
    %34 = math.tanh %33 : vector<16x128xf32>
    %35 = arith.mulf %28, %34 : vector<16x128xf32>
    %c1_i32 = arith.constant 1 : i32
    %c16_i32_18 = arith.constant 16 : i32
    %36 = arith.muli %c1_i32, %c16_i32_18 : i32
    %37 = tpu.assume_multiple %36, 16 : i32
    %38 = arith.index_cast %37 : i32 to index
    %c0_19 = arith.constant 0 : index
    %39 = vector.load %arg10[%38, %c0_19] : memref<128x512xf32, #tpu.memory_space<vmem>>, vector<16x512xf32>
    %40 = arith.truncf %35 : vector<16x128xf32> to vector<16x128xbf16>
    %cst_20 = arith.constant dense<0.000000e+00> : vector<16x512xf32>
    %41 = tpu.matmul %40, %10, %cst_20 {dimension_numbers = #tpu.dot_dimension_numbers<[1], [0], [0], [1], [0, 0, 1, 1], [], []>} : vector<16x128xbf16>, vector<128x512xbf16>, vector<16x512xf32> -> vector<16x512xf32>
    %42 = arith.addf %39, %41 : vector<16x512xf32>
    %43 = vector.extract_strided_slice %42 {offsets = [0, 0], sizes = [16, 384], strides = [1, 1]} : vector<16x512xf32> to vector<16x384xf32>
    %44 = arith.negf %43 : vector<16x384xf32>
    %45 = math.exp %44 : vector<16x384xf32>
    %cst_21 = arith.constant 1.000000e+00 : f32
    %46 = vector.broadcast %cst_21 : f32 to vector<16x384xf32>
    %47 = arith.addf %46, %45 : vector<16x384xf32>
    %48 = arith.divf %46, %47 : vector<16x384xf32>
    %49 = vector.extract_strided_slice %48 {offsets = [0, 0], sizes = [16, 128], strides = [1, 1]} : vector<16x384xf32> to vector<16x128xf32>
    %50 = vector.extract_strided_slice %48 {offsets = [0, 128], sizes = [16, 128], strides = [1, 1]} : vector<16x384xf32> to vector<16x128xf32>
    %51 = vector.extract_strided_slice %48 {offsets = [0, 256], sizes = [16, 128], strides = [1, 1]} : vector<16x384xf32> to vector<16x128xf32>
    %52 = vector.extract_strided_slice %42 {offsets = [0, 384], sizes = [16, 128], strides = [1, 1]} : vector<16x512xf32> to vector<16x128xf32>
    %53 = math.tanh %52 : vector<16x128xf32>
    %54 = arith.mulf %50, %33 : vector<16x128xf32>
    %55 = arith.mulf %49, %53 : vector<16x128xf32>
    %56 = arith.addf %54, %55 : vector<16x128xf32>
    %57 = math.tanh %56 : vector<16x128xf32>
    %58 = arith.mulf %51, %57 : vector<16x128xf32>
    %c2_i32 = arith.constant 2 : i32
    %c16_i32_22 = arith.constant 16 : i32
    %59 = arith.muli %c2_i32, %c16_i32_22 : i32
    %60 = tpu.assume_multiple %59, 16 : i32
    %61 = arith.index_cast %60 : i32 to index
    %c0_23 = arith.constant 0 : index
    %62 = vector.load %arg10[%61, %c0_23] : memref<128x512xf32, #tpu.memory_space<vmem>>, vector<16x512xf32>
    %63 = arith.truncf %58 : vector<16x128xf32> to vector<16x128xbf16>
    %cst_24 = arith.constant dense<0.000000e+00> : vector<16x512xf32>
    %64 = tpu.matmul %63, %10, %cst_24 {dimension_numbers = #tpu.dot_dimension_numbers<[1], [0], [0], [1], [0, 0, 1, 1], [], []>} : vector<16x128xbf16>, vector<128x512xbf16>, vector<16x512xf32> -> vector<16x512xf32>
    %65 = arith.addf %62, %64 : vector<16x512xf32>
    %66 = vector.extract_strided_slice %65 {offsets = [0, 0], sizes = [16, 384], strides = [1, 1]} : vector<16x512xf32> to vector<16x384xf32>
    %67 = arith.negf %66 : vector<16x384xf32>
    %68 = math.exp %67 : vector<16x384xf32>
    %cst_25 = arith.constant 1.000000e+00 : f32
    %69 = vector.broadcast %cst_25 : f32 to vector<16x384xf32>
    %70 = arith.addf %69, %68 : vector<16x384xf32>
    %71 = arith.divf %69, %70 : vector<16x384xf32>
    %72 = vector.extract_strided_slice %71 {offsets = [0, 0], sizes = [16, 128], strides = [1, 1]} : vector<16x384xf32> to vector<16x128xf32>
    %73 = vector.extract_strided_slice %71 {offsets = [0, 128], sizes = [16, 128], strides = [1, 1]} : vector<16x384xf32> to vector<16x128xf32>
    %74 = vector.extract_strided_slice %71 {offsets = [0, 256], sizes = [16, 128], strides = [1, 1]} : vector<16x384xf32> to vector<16x128xf32>
    %75 = vector.extract_strided_slice %65 {offsets = [0, 384], sizes = [16, 128], strides = [1, 1]} : vector<16x512xf32> to vector<16x128xf32>
    %76 = math.tanh %75 : vector<16x128xf32>
    %77 = arith.mulf %73, %56 : vector<16x128xf32>
    %78 = arith.mulf %72, %76 : vector<16x128xf32>
    %79 = arith.addf %77, %78 : vector<16x128xf32>
    %80 = math.tanh %79 : vector<16x128xf32>
    %81 = arith.mulf %74, %80 : vector<16x128xf32>
    %c3_i32 = arith.constant 3 : i32
    %c16_i32_26 = arith.constant 16 : i32
    %82 = arith.muli %c3_i32, %c16_i32_26 : i32
    %83 = tpu.assume_multiple %82, 16 : i32
    %84 = arith.index_cast %83 : i32 to index
    %c0_27 = arith.constant 0 : index
    %85 = vector.load %arg10[%84, %c0_27] : memref<128x512xf32, #tpu.memory_space<vmem>>, vector<16x512xf32>
    %86 = arith.truncf %81 : vector<16x128xf32> to vector<16x128xbf16>
    %cst_28 = arith.constant dense<0.000000e+00> : vector<16x512xf32>
    %87 = tpu.matmul %86, %10, %cst_28 {dimension_numbers = #tpu.dot_dimension_numbers<[1], [0], [0], [1], [0, 0, 1, 1], [], []>} : vector<16x128xbf16>, vector<128x512xbf16>, vector<16x512xf32> -> vector<16x512xf32>
    %88 = arith.addf %85, %87 : vector<16x512xf32>
    %89 = vector.extract_strided_slice %88 {offsets = [0, 0], sizes = [16, 384], strides = [1, 1]} : vector<16x512xf32> to vector<16x384xf32>
    %90 = arith.negf %89 : vector<16x384xf32>
    %91 = math.exp %90 : vector<16x384xf32>
    %cst_29 = arith.constant 1.000000e+00 : f32
    %92 = vector.broadcast %cst_29 : f32 to vector<16x384xf32>
    %93 = arith.addf %92, %91 : vector<16x384xf32>
    %94 = arith.divf %92, %93 : vector<16x384xf32>
    %95 = vector.extract_strided_slice %94 {offsets = [0, 0], sizes = [16, 128], strides = [1, 1]} : vector<16x384xf32> to vector<16x128xf32>
    %96 = vector.extract_strided_slice %94 {offsets = [0, 128], sizes = [16, 128], strides = [1, 1]} : vector<16x384xf32> to vector<16x128xf32>
    %97 = vector.extract_strided_slice %94 {offsets = [0, 256], sizes = [16, 128], strides = [1, 1]} : vector<16x384xf32> to vector<16x128xf32>
    %98 = vector.extract_strided_slice %88 {offsets = [0, 384], sizes = [16, 128], strides = [1, 1]} : vector<16x512xf32> to vector<16x128xf32>
    %99 = math.tanh %98 : vector<16x128xf32>
    %100 = arith.mulf %96, %79 : vector<16x128xf32>
    %101 = arith.mulf %95, %99 : vector<16x128xf32>
    %102 = arith.addf %100, %101 : vector<16x128xf32>
    %103 = math.tanh %102 : vector<16x128xf32>
    %104 = arith.mulf %97, %103 : vector<16x128xf32>
    %c4_i32 = arith.constant 4 : i32
    %c16_i32_30 = arith.constant 16 : i32
    %105 = arith.muli %c4_i32, %c16_i32_30 : i32
    %106 = tpu.assume_multiple %105, 16 : i32
    %107 = arith.index_cast %106 : i32 to index
    %c0_31 = arith.constant 0 : index
    %108 = vector.load %arg10[%107, %c0_31] : memref<128x512xf32, #tpu.memory_space<vmem>>, vector<16x512xf32>
    %109 = arith.truncf %104 : vector<16x128xf32> to vector<16x128xbf16>
    %cst_32 = arith.constant dense<0.000000e+00> : vector<16x512xf32>
    %110 = tpu.matmul %109, %10, %cst_32 {dimension_numbers = #tpu.dot_dimension_numbers<[1], [0], [0], [1], [0, 0, 1, 1], [], []>} : vector<16x128xbf16>, vector<128x512xbf16>, vector<16x512xf32> -> vector<16x512xf32>
    %111 = arith.addf %108, %110 : vector<16x512xf32>
    %112 = vector.extract_strided_slice %111 {offsets = [0, 0], sizes = [16, 384], strides = [1, 1]} : vector<16x512xf32> to vector<16x384xf32>
    %113 = arith.negf %112 : vector<16x384xf32>
    %114 = math.exp %113 : vector<16x384xf32>
    %cst_33 = arith.constant 1.000000e+00 : f32
    %115 = vector.broadcast %cst_33 : f32 to vector<16x384xf32>
    %116 = arith.addf %115, %114 : vector<16x384xf32>
    %117 = arith.divf %115, %116 : vector<16x384xf32>
    %118 = vector.extract_strided_slice %117 {offsets = [0, 0], sizes = [16, 128], strides = [1, 1]} : vector<16x384xf32> to vector<16x128xf32>
    %119 = vector.extract_strided_slice %117 {offsets = [0, 128], sizes = [16, 128], strides = [1, 1]} : vector<16x384xf32> to vector<16x128xf32>
    %120 = vector.extract_strided_slice %117 {offsets = [0, 256], sizes = [16, 128], strides = [1, 1]} : vector<16x384xf32> to vector<16x128xf32>
    %121 = vector.extract_strided_slice %111 {offsets = [0, 384], sizes = [16, 128], strides = [1, 1]} : vector<16x512xf32> to vector<16x128xf32>
    %122 = math.tanh %121 : vector<16x128xf32>
    %123 = arith.mulf %119, %102 : vector<16x128xf32>
    %124 = arith.mulf %118, %122 : vector<16x128xf32>
    %125 = arith.addf %123, %124 : vector<16x128xf32>
    %126 = math.tanh %125 : vector<16x128xf32>
    %127 = arith.mulf %120, %126 : vector<16x128xf32>
    %c5_i32 = arith.constant 5 : i32
    %c16_i32_34 = arith.constant 16 : i32
    %128 = arith.muli %c5_i32, %c16_i32_34 : i32
    %129 = tpu.assume_multiple %128, 16 : i32
    %130 = arith.index_cast %129 : i32 to index
    %c0_35 = arith.constant 0 : index
    %131 = vector.load %arg10[%130, %c0_35] : memref<128x512xf32, #tpu.memory_space<vmem>>, vector<16x512xf32>
    %132 = arith.truncf %127 : vector<16x128xf32> to vector<16x128xbf16>
    %cst_36 = arith.constant dense<0.000000e+00> : vector<16x512xf32>
    %133 = tpu.matmul %132, %10, %cst_36 {dimension_numbers = #tpu.dot_dimension_numbers<[1], [0], [0], [1], [0, 0, 1, 1], [], []>} : vector<16x128xbf16>, vector<128x512xbf16>, vector<16x512xf32> -> vector<16x512xf32>
    %134 = arith.addf %131, %133 : vector<16x512xf32>
    %135 = vector.extract_strided_slice %134 {offsets = [0, 0], sizes = [16, 384], strides = [1, 1]} : vector<16x512xf32> to vector<16x384xf32>
    %136 = arith.negf %135 : vector<16x384xf32>
    %137 = math.exp %136 : vector<16x384xf32>
    %cst_37 = arith.constant 1.000000e+00 : f32
    %138 = vector.broadcast %cst_37 : f32 to vector<16x384xf32>
    %139 = arith.addf %138, %137 : vector<16x384xf32>
    %140 = arith.divf %138, %139 : vector<16x384xf32>
    %141 = vector.extract_strided_slice %140 {offsets = [0, 0], sizes = [16, 128], strides = [1, 1]} : vector<16x384xf32> to vector<16x128xf32>
    %142 = vector.extract_strided_slice %140 {offsets = [0, 128], sizes = [16, 128], strides = [1, 1]} : vector<16x384xf32> to vector<16x128xf32>
    %143 = vector.extract_strided_slice %140 {offsets = [0, 256], sizes = [16, 128], strides = [1, 1]} : vector<16x384xf32> to vector<16x128xf32>
    %144 = vector.extract_strided_slice %134 {offsets = [0, 384], sizes = [16, 128], strides = [1, 1]} : vector<16x512xf32> to vector<16x128xf32>
    %145 = math.tanh %144 : vector<16x128xf32>
    %146 = arith.mulf %142, %125 : vector<16x128xf32>
    %147 = arith.mulf %141, %145 : vector<16x128xf32>
    %148 = arith.addf %146, %147 : vector<16x128xf32>
    %149 = math.tanh %148 : vector<16x128xf32>
    %150 = arith.mulf %143, %149 : vector<16x128xf32>
    %c6_i32 = arith.constant 6 : i32
    %c16_i32_38 = arith.constant 16 : i32
    %151 = arith.muli %c6_i32, %c16_i32_38 : i32
    %152 = tpu.assume_multiple %151, 16 : i32
    %153 = arith.index_cast %152 : i32 to index
    %c0_39 = arith.constant 0 : index
    %154 = vector.load %arg10[%153, %c0_39] : memref<128x512xf32, #tpu.memory_space<vmem>>, vector<16x512xf32>
    %155 = arith.truncf %150 : vector<16x128xf32> to vector<16x128xbf16>
    %cst_40 = arith.constant dense<0.000000e+00> : vector<16x512xf32>
    %156 = tpu.matmul %155, %10, %cst_40 {dimension_numbers = #tpu.dot_dimension_numbers<[1], [0], [0], [1], [0, 0, 1, 1], [], []>} : vector<16x128xbf16>, vector<128x512xbf16>, vector<16x512xf32> -> vector<16x512xf32>
    %157 = arith.addf %154, %156 : vector<16x512xf32>
    %158 = vector.extract_strided_slice %157 {offsets = [0, 0], sizes = [16, 384], strides = [1, 1]} : vector<16x512xf32> to vector<16x384xf32>
    %159 = arith.negf %158 : vector<16x384xf32>
    %160 = math.exp %159 : vector<16x384xf32>
    %cst_41 = arith.constant 1.000000e+00 : f32
    %161 = vector.broadcast %cst_41 : f32 to vector<16x384xf32>
    %162 = arith.addf %161, %160 : vector<16x384xf32>
    %163 = arith.divf %161, %162 : vector<16x384xf32>
    %164 = vector.extract_strided_slice %163 {offsets = [0, 0], sizes = [16, 128], strides = [1, 1]} : vector<16x384xf32> to vector<16x128xf32>
    %165 = vector.extract_strided_slice %163 {offsets = [0, 128], sizes = [16, 128], strides = [1, 1]} : vector<16x384xf32> to vector<16x128xf32>
    %166 = vector.extract_strided_slice %163 {offsets = [0, 256], sizes = [16, 128], strides = [1, 1]} : vector<16x384xf32> to vector<16x128xf32>
    %167 = vector.extract_strided_slice %157 {offsets = [0, 384], sizes = [16, 128], strides = [1, 1]} : vector<16x512xf32> to vector<16x128xf32>
    %168 = math.tanh %167 : vector<16x128xf32>
    %169 = arith.mulf %165, %148 : vector<16x128xf32>
    %170 = arith.mulf %164, %168 : vector<16x128xf32>
    %171 = arith.addf %169, %170 : vector<16x128xf32>
    %172 = math.tanh %171 : vector<16x128xf32>
    %173 = arith.mulf %166, %172 : vector<16x128xf32>
    %c7_i32 = arith.constant 7 : i32
    %c16_i32_42 = arith.constant 16 : i32
    %174 = arith.muli %c7_i32, %c16_i32_42 : i32
    %175 = tpu.assume_multiple %174, 16 : i32
    %176 = arith.index_cast %175 : i32 to index
    %c0_43 = arith.constant 0 : index
    %177 = vector.load %arg10[%176, %c0_43] : memref<128x512xf32, #tpu.memory_space<vmem>>, vector<16x512xf32>
    %178 = arith.truncf %173 : vector<16x128xf32> to vector<16x128xbf16>
    %cst_44 = arith.constant dense<0.000000e+00> : vector<16x512xf32>
    %179 = tpu.matmul %178, %10, %cst_44 {dimension_numbers = #tpu.dot_dimension_numbers<[1], [0], [0], [1], [0, 0, 1, 1], [], []>} : vector<16x128xbf16>, vector<128x512xbf16>, vector<16x512xf32> -> vector<16x512xf32>
    %180 = arith.addf %177, %179 : vector<16x512xf32>
    %181 = vector.extract_strided_slice %180 {offsets = [0, 0], sizes = [16, 384], strides = [1, 1]} : vector<16x512xf32> to vector<16x384xf32>
    %182 = arith.negf %181 : vector<16x384xf32>
    %183 = math.exp %182 : vector<16x384xf32>
    %cst_45 = arith.constant 1.000000e+00 : f32
    %184 = vector.broadcast %cst_45 : f32 to vector<16x384xf32>
    %185 = arith.addf %184, %183 : vector<16x384xf32>
    %186 = arith.divf %184, %185 : vector<16x384xf32>
    %187 = vector.extract_strided_slice %186 {offsets = [0, 0], sizes = [16, 128], strides = [1, 1]} : vector<16x384xf32> to vector<16x128xf32>
    %188 = vector.extract_strided_slice %186 {offsets = [0, 128], sizes = [16, 128], strides = [1, 1]} : vector<16x384xf32> to vector<16x128xf32>
    %189 = vector.extract_strided_slice %186 {offsets = [0, 256], sizes = [16, 128], strides = [1, 1]} : vector<16x384xf32> to vector<16x128xf32>
    %190 = vector.extract_strided_slice %180 {offsets = [0, 384], sizes = [16, 128], strides = [1, 1]} : vector<16x512xf32> to vector<16x128xf32>
    %191 = math.tanh %190 : vector<16x128xf32>
    %192 = arith.mulf %188, %171 : vector<16x128xf32>
    %193 = arith.mulf %187, %191 : vector<16x128xf32>
    %194 = arith.addf %192, %193 : vector<16x128xf32>
    %195 = math.tanh %194 : vector<16x128xf32>
    %196 = arith.mulf %189, %195 : vector<16x128xf32>
    %c8_i32 = arith.constant 8 : i32
    %c0_46 = arith.constant 0 : index
    %c0_47 = arith.constant 0 : index
    %197 = vector.load %arg11[%c0_46, %c0_47] : memref<16x128xf32, #tpu.memory_space<vmem>>, vector<16x128xf32>
    tpu.vector_store %arg11[%c0_46, %c0_47], %196 {strides = array<i32>} : memref<16x128xf32, #tpu.memory_space<vmem>>, vector<16x128xf32>,
    %c0_48 = arith.constant 0 : index
    %c0_49 = arith.constant 0 : index
    %198 = vector.load %arg12[%c0_48, %c0_49] : memref<16x128xf32, #tpu.memory_space<vmem>>, vector<16x128xf32>
    tpu.vector_store %arg12[%c0_48, %c0_49], %194 {strides = array<i32>} : memref<16x128xf32, #tpu.memory_space<vmem>>, vector<16x128xf32>,
    %c1_i32_50 = arith.constant 1 : i32
    %199 = arith.cmpi eq, %arg0, %c1_i32_50 : i32
    %200 = arith.extui %199 : i1 to i32
    %c0_i32_51 = arith.constant 0 : i32
    %201 = arith.cmpi ne, %200, %c0_i32_51 : i32
    scf.if %201 {
      %202 = arith.truncf %196 : vector<16x128xf32> to vector<16x128xbf16>
      %c0_52 = arith.constant 0 : index
      %c0_53 = arith.constant 0 : index
      %203 = vector.load %arg5[%c0_52, %c0_53] : memref<128x128xbf16, #tpu.memory_space<vmem>>, vector<128x128xbf16>
      %cst_54 = arith.constant dense<0.000000e+00> : vector<16x128xf32>
      %204 = tpu.matmul %202, %203, %cst_54 {dimension_numbers = #tpu.dot_dimension_numbers<[1], [0], [0], [1], [0, 0, 1, 1], [], []>} : vector<16x128xbf16>, vector<128x128xbf16>, vector<16x128xf32> -> vector<16x128xf32>
      %c0_55 = arith.constant 0 : index
      %c0_56 = arith.constant 0 : index
      %205 = vector.load %arg6[%c0_55, %c0_56] : memref<1x128xf32, #tpu.memory_space<vmem>>, vector<1x128xf32>
      %206 = vector.broadcast %205 : vector<1x128xf32> to vector<16x128xf32>
      %207 = arith.addf %204, %206 : vector<16x128xf32>
      %208 = arith.negf %207 : vector<16x128xf32>
      %209 = math.exp %208 : vector<16x128xf32>
      %cst_57 = arith.constant 1.000000e+00 : f32
      %210 = vector.broadcast %cst_57 : f32 to vector<16x128xf32>
      %211 = arith.addf %210, %209 : vector<16x128xf32>
      %212 = arith.divf %210, %211 : vector<16x128xf32>
      %213 = arith.mulf %207, %212 : vector<16x128xf32>
      %214 = arith.truncf %213 : vector<16x128xf32> to vector<16x128xbf16>
      %c0_58 = arith.constant 0 : index
      %c0_59 = arith.constant 0 : index
      %215 = vector.load %arg7[%c0_58, %c0_59] : memref<128x128xbf16, #tpu.memory_space<vmem>>, vector<128x128xbf16>
      %cst_60 = arith.constant dense<0.000000e+00> : vector<16x128xf32>
      %216 = tpu.matmul %214, %215, %cst_60 {dimension_numbers = #tpu.dot_dimension_numbers<[1], [0], [0], [1], [0, 0, 1, 1], [], []>} : vector<16x128xbf16>, vector<128x128xbf16>, vector<16x128xf32> -> vector<16x128xf32>
      %c0_61 = arith.constant 0 : index
      %c0_62 = arith.constant 0 : index
      %217 = vector.load %arg8[%c0_61, %c0_62] : memref<1x128xf32, #tpu.memory_space<vmem>>, vector<1x128xf32>
      %218 = vector.broadcast %217 : vector<1x128xf32> to vector<16x128xf32>
      %219 = arith.addf %216, %218 : vector<16x128xf32>
      %220 = arith.negf %219 : vector<16x128xf32>
      %221 = math.exp %220 : vector<16x128xf32>
      %cst_63 = arith.constant 1.000000e+00 : f32
      %222 = vector.broadcast %cst_63 : f32 to vector<16x128xf32>
      %223 = arith.addf %222, %221 : vector<16x128xf32>
      %224 = arith.divf %222, %223 : vector<16x128xf32>
      %225 = arith.mulf %219, %224 : vector<16x128xf32>
      %c0_64 = arith.constant 0 : index
      %c0_65 = arith.constant 0 : index
      %226 = vector.load %arg9[%c0_64, %c0_65] : memref<16x128xf32, #tpu.memory_space<vmem>>, vector<16x128xf32>
      tpu.vector_store %arg9[%c0_64, %c0_65], %225 {strides = array<i32>} : memref<16x128xf32, #tpu.memory_space<vmem>>, vector<16x128xf32>,
    } else {
    }
    return
  }
  func.func @transform_0(%arg0: i32) -> (i32, i32) {
    %c0_i32 = arith.constant 0 : i32
    %c0_i32_0 = arith.constant 0 : i32
    return %arg0, %c0_i32 : i32, i32
  }
  func.func @transform_1(%arg0: i32) -> (i32, i32) {
    %c0_i32 = arith.constant 0 : i32
    %c0_i32_0 = arith.constant 0 : i32
    %c0_i32_1 = arith.constant 0 : i32
    return %c0_i32, %c0_i32_0 : i32, i32
  }
  func.func @transform_2(%arg0: i32) -> (i32, i32) {
    %c0_i32 = arith.constant 0 : i32
    %c0_i32_0 = arith.constant 0 : i32
    %c0_i32_1 = arith.constant 0 : i32
    return %c0_i32, %c0_i32_0 : i32, i32
  }
  func.func @transform_3(%arg0: i32) -> (i32, i32) {
    %c0_i32 = arith.constant 0 : i32
    %c0_i32_0 = arith.constant 0 : i32
    %c0_i32_1 = arith.constant 0 : i32
    return %c0_i32, %c0_i32_0 : i32, i32
  }
  func.func @transform_4(%arg0: i32) -> (i32, i32) {
    %c0_i32 = arith.constant 0 : i32
    %c0_i32_0 = arith.constant 0 : i32
    %c0_i32_1 = arith.constant 0 : i32
    return %c0_i32, %c0_i32_0 : i32, i32
  }
  func.func @transform_5(%arg0: i32) -> (i32, i32) {
    %c0_i32 = arith.constant 0 : i32
    %c0_i32_0 = arith.constant 0 : i32
    %c0_i32_1 = arith.constant 0 : i32
    return %c0_i32, %c0_i32_0 : i32, i32
  }
  func.func @transform_6(%arg0: i32) -> (i32, i32) {
    %c0_i32 = arith.constant 0 : i32
    %c0_i32_0 = arith.constant 0 : i32
    %c0_i32_1 = arith.constant 0 : i32
    return %c0_i32, %c0_i32_0 : i32, i32
  }
  func.func @transform_7(%arg0: i32) -> (i32, i32) {
    %c0_i32 = arith.constant 0 : i32
    %c0_i32_0 = arith.constant 0 : i32
    %c0_i32_1 = arith.constant 0 : i32
    return %c0_i32, %c0_i32_0 : i32, i32
  }
  func.func @transform_8(%arg0: i32) -> (i32, i32) {
    %c0_i32 = arith.constant 0 : i32
    %c0_i32_0 = arith.constant 0 : i32
    %c0_i32_1 = arith.constant 0 : i32
    return %c0_i32, %c0_i32_0 : i32, i32
  }
}

</mosaic_0001>

<bundles_post_ra>
// kernel: tpu_custom_call.1
= control target key start
LH: loop header
LB: loop body
LE: loop exit
PB: predicated region body
PF: predicated region fallthrough
CT: control target
= control target key end

     0   :  { %13 = vsyncpa [#allocation6], 0  ;;  %s4194_s0 = inlined_call_operand.vmem [shape: bf16[256,16], index: 0, kind: input, shape index: {}]   ;;  %s4195_s1 = inlined_call_operand.hbm [shape: bf16[16,512], index: 1, kind: input, shape index: {}]   ;;  %s4196_s2 = inlined_call_operand.hbm [shape: bf16[128,512], index: 2, kind: input, shape index: {}]   ;;  %s4197_s3 = inlined_call_operand.vmem [shape: f32[1,512], index: 3, kind: input, shape index: {}]   ;;  %s4198_s4 = inlined_call_operand.vmem [shape: bf16[128,128], index: 4, kind: input, shape index: {}]   ;;  %s4199_s5 = inlined_call_operand.vmem [shape: f32[1,128], index: 5, kind: input, shape index: {}]   ;;  %s4200_s6 = inlined_call_operand.vmem [shape: bf16[128,128], index: 6, kind: input, shape index: {}]   ;;  %s4201_s7 = inlined_call_operand.vmem [shape: f32[1,128], index: 7, kind: input, shape index: {}]   ;;  %s4202_s8 = inlined_call_operand.hbm [shape: f32[16,128], index: 8, kind: output, shape index: {}]  }
   0x1   :  { %14 = vsyncpa [#allocation9], 0 }
   0x2   :  { %15 = vsyncpa [#allocation7], 0  ;;  %s3301_s27 = smov 0  }
   0x3 LB: > { %s3307_s28 = sadd.s32 4294967295, %s3243_s27   ;;  %p2520_p0 = scmp.ge.s32.totalorder %s3243_s27, 1  ;;  %s3243_s27 = sphi %s3301_s27, %s21_s27  }
   0x4   : > { %p220_p1 = scmp.lt.s32.totalorder %s3243_s27, 3  ;;  %s3245_s29 = smov [#allocation5]  }
   0x5   : > { %s232_s30 = sshll.u32 %s3245_s29, 4  ;;  %p2742_p4 = scmp.eq.s32.totalorder %s3307_s28, 0  ;;  %s233_s30 = int_to_ptr.vmem [resolvable:$true] %s232_s30 }
   0x6   : > { %p3312_p3 = pnand %p2520_p0, %p220_p1  ;;  %s3246_s10 = smov [#allocation8]  }
   0x7   : > { %s245_s11 = sshll.u32 %s3246_s10, 4  ;;  %s3160_s13 = scalar_lea.vmem %s233_s30, 512  ;;  %s246_s11 = int_to_ptr.vmem [resolvable:$true] %s245_s11 }
   0x8   : > { %p2735_p5 = pneg %p3312_p3  ;;  %p3161_p8 = scmp.ne.s32.totalorder %s233_s30, %s3160_s13 }
   0x9   : > { %p3168_p11 = scmp.lt.s32.totalorder %s233_s30, %s233_s30  ;;  %p3169_p12 = scmp.lt.s32.totalorder %s3160_s13, %s3160_s13 }
   0xa   : > { %p3321_p6 = pnand %p2742_p4, %p2735_p5 }
   0xb   : > { %p3170_p13 = por %p3169_p12, %p3168_p11 }
   0xc   : > { %p3151_p7 = pneg %p3321_p6 }
   0xe   : > { %p3163_p9 = pnand %p3161_p8, %p3151_p7 }
  0x10   : > { %p3164_p10 = pneg %p3163_p9 }
  0x12   : > { %p3171_p0 = pnand %p3170_p13, %p3164_p10 }
  0x14   : > { %3174 = shalt.err (!%p3171_p0)
}
  0x15   : > { %s3247_s14 = smov 256   ;;  %s3248_s15 = smov 16  }
  0x16   : > { %2738 = dma.hbm_to_vmem [thread:$0]  (!%p3321_p6), %s4195_s1, 512, %s233_s30, [#allocation6], %s3247_s14, %s3247_s14, %s3248_s15  }
  0x17   : > { %s3186_s18 = scalar_lea.vmem %s246_s11, 4096  ;;  %p3194_p9 = scmp.lt.s32.totalorder %s246_s11, %s246_s11 }
  0x18   : > { %p3187_p1 = scmp.ne.s32.totalorder %s246_s11, %s3186_s18  ;;  %p3195_p2 = scmp.lt.s32.totalorder %s3186_s18, %s3186_s18 }
  0x1a   : > { %p3189_p5 = pnand %p3187_p1, %p3151_p7  ;;  %p3196_p11 = por %p3195_p2, %p3194_p9 }
  0x1c   : > { %p3190_p8 = pneg %p3189_p5 }
  0x1e   : > { %p3197_p10 = pnand %p3196_p11, %p3190_p8 }
  0x20   : > { %3200 = shalt.err (!%p3197_p10)
}
  0x21   : > { %2741 = dma.hbm_to_vmem [thread:$0]  (!%p3321_p6), %s4196_s2, 4096, %s246_s11, [#allocation9], %s3247_s14, %s3247_s14, %s3248_s15  }
  0x22   : > { %285 = sbr.rel (%p3312_p3) target bundleno = 2679 (0xa77), region = 52 }
  0x27   : > { %3230 = dma.done.wait (%p2742_p4), [#allocation6], 512  }
  0x28   : > { %3232 = vsyncadd (%p2742_p4), [#allocation6], 4294966784 }
  0x29   : > { %3234 = dma.done.wait (%p2742_p4), [#allocation9], 4096  }
  0x2a   : > { %3236 = vsyncadd (%p2742_p4), [#allocation9], 4294963200  ;;  %s2527_s21 = sshll.u32 %s3307_s28, 4  ;;  %p4207_p3 = scmp.ne.s32.totalorder %s3307_s28, 0 }
  0x2b   : > { %p319_p2 = scmp.lt.s32.totalorder %s2527_s21, 31 }
  0x2c   : > { %328 = sbr.rel (%p4207_p3) target bundleno = 52 (0x34), region = 64 }
  0x2d   : > { %s4312_s21 = smov (!%p319_p2, %s2527_s21), 31 }
  0x2e   : > { %s2528_s22 = sshll.u32 %s4312_s21, 2 }
  0x2f   : > { %s3357_s25 = scalar_lea.vmem %s4194_s0, %s2528_s22 }
  0x31   : > { %v3249_v0 = vmov 0.0  }
  0x32   : > { %329 = vst [vmem:[#allocation3] sm:$0xff] %v3249_v0  ;;  %330 = vst [vmem:[#allocation3 + $0x8] sm:$0xff] %v3249_v0 }
  0x33   : > { %331 = vst [vmem:[#allocation4 + $0x8] sm:$0xff] %v3249_v0  ;;  %332 = vst [vmem:[#allocation4] sm:$0xff] %v3249_v0 }
  0x34 PF: > { %v2767_v1 = vld [vmem:[#allocation5 + $0x4] ss:$16 sps:$4 sm:$0xff]   ;;  %v2769_v2 = vld [vmem:[#allocation5 + $0xc] ss:$16 sps:$4 sm:$0xff]   ;;  %v4203_v3 = vmov 0   ;;  %vm435_vm0 = vcmask 130048   ;;  %v355_v49 = vlaneseq }
  0x35   : > { %492 = vmatprep.mubr.bf16.mxu0 %v4203_v3  ;;  %605 = vmatprep.mubr.bf16.mxu1 %v4203_v3  ;;  %v2771_v4 = vld [vmem:[#allocation5] ss:$16 sps:$4 sm:$0xff]   ;;  %v2772_v5 = vld [vmem:[#allocation5 + $0x8] ss:$16 sps:$4 sm:$0xff]   ;;  %v3364_v7 = vld [vmem:[#allocation8 + $0xe4] ss:$16 sps:$4 sm:$0xff]  }
  0x36   : > { %474 = vmatprep.subr.bf16.mxu0 %v2767_v1  ;;  %587 = vmatprep.subr.bf16.mxu1 %v2769_v2  ;;  %v2773_v6 = vld [vmem:[%s3357_s25] sm:$0xff]   ;;  %v3381_v12 = vld [vmem:[#allocation8 + $0xec] ss:$16 sps:$4 sm:$0xff]   ;;  %v3383_v13 = vld [vmem:[#allocation8 + $0xe8] ss:$16 sps:$4 sm:$0xff]   ;;  %v356_v50 = vshrl.u32 %v355_v49, 7 }
  0x37   : > { %475 = vmatpush1.bf16.msra.mxu0 %v2771_v4  ;;  %588 = vmatpush1.bf16.msra.mxu1 %v2772_v5  ;;  %v3366_v8 = vld [vmem:[#allocation8 + $0xe0] ss:$16 sps:$4 sm:$0xff]   ;;  %v3369_v9 = vld [vmem:[#allocation8 + $0xc4] ss:$16 sps:$4 sm:$0xff]   ;;  %v2777_v14 = vld [vmem:[%s3357_s25 + $0x8] sm:$0xff]   ;;  %p2638_p4 = scmp.ne.s32.totalorder %s3307_s28, 1 }
  0x38   : > { %958 = vmatprep.subr.bf16.mxu0 %v3364_v7  ;;  %v3375_v10 = vld [vmem:[#allocation8 + $0xc0] ss:$16 sps:$4 sm:$0xff]   ;;  %v3379_v11 = vld [vmem:[#allocation8 + $0xa4] ss:$16 sps:$4 sm:$0xff]   ;;  %1001 = vmatprep.subr.bf16.mxu1 %v3381_v12  ;;  %v3394_v17 = vld [vmem:[#allocation8 + $0xcc] ss:$16 sps:$4 sm:$0xff]  }
  0x39   : > { %v3387_v15 = vld [vmem:[#allocation8 + $0xa0] ss:$16 sps:$4 sm:$0xff]   ;;  %v3392_v16 = vld [vmem:[#allocation8 + $0x84] ss:$16 sps:$4 sm:$0xff]   ;;  %v3396_v18 = vld [vmem:[#allocation8 + $0xc8] ss:$16 sps:$4 sm:$0xff]  }
  0x3a   : > { %2542 = vmatmul.mubr.msk.bf16.vlgmr.msra.gmra.mxu0 %vm435_vm0, %v2773_v6  ;;  %2550 = vmatmul.mubr.msk.bf16.vlgmr.msra.gmra.mxu1 %vm435_vm0, %v2773_v6  ;;  %v3402_v19 = vld [vmem:[#allocation8 + $0x80] ss:$16 sps:$4 sm:$0xff]   ;;  %v3404_v20 = vld [vmem:[#allocation8 + $0x64] ss:$16 sps:$4 sm:$0xff]   ;;  %v3408_v21 = vld [vmem:[#allocation8 + $0xac] ss:$16 sps:$4 sm:$0xff]  }
  0x3b   : > { %959 = vmatpush1.bf16.msra.mxu0 %v3366_v8  ;;  %502 = vmatprep.mubr.bf16.mxu0 %v4203_v3  ;;  %v3412_v22 = vld [vmem:[#allocation8 + $0xa8] ss:$16 sps:$4 sm:$0xff]   ;;  %v2781_v23 = vld [vmem:[%s3357_s25 + $0x10] sm:$0xff]   ;;  %v3421_v26 = vld [vmem:[#allocation8 + $0x8c] ss:$16 sps:$4 sm:$0xff]   ;;  %v357_v55 = vsub.s32 0, %v356_v50 }
  0x3c   : > { %615 = vmatprep.mubr.bf16.mxu1 %v4203_v3  ;;  %960 = vmatprep.subr.bf16.mxu0 %v3369_v9  ;;  %v3416_v24 = vld [vmem:[#allocation8 + $0x60] ss:$16 sps:$4 sm:$0xff]   ;;  %v3419_v25 = vld [vmem:[#allocation8 + $0x44] ss:$16 sps:$4 sm:$0xff]   ;;  %v3425_v27 = vld [vmem:[#allocation8 + $0x88] ss:$16 sps:$4 sm:$0xff]  }
  0x3d   : > { %1002 = vmatpush1.bf16.msra.mxu1 %v3383_v13  ;;  %v3431_v28 = vld [vmem:[#allocation8 + $0x6c] ss:$16 sps:$4 sm:$0xff]   ;;  %v3434_v29 = vld [vmem:[#allocation8 + $0x40] ss:$16 sps:$4 sm:$0xff]   ;;  %v3439_v30 = vld [vmem:[#allocation8 + $0x24] ss:$16 sps:$4 sm:$0xff]  }
  0x3e   : > { %1003 = vmatprep.subr.bf16.mxu1 %v3394_v17  ;;  %v3441_v31 = vld [vmem:[#allocation8 + $0x68] ss:$16 sps:$4 sm:$0xff]   ;;  %v3445_v33 = vld [vmem:[#allocation8 + $0x20] ss:$16 sps:$4 sm:$0xff]   ;;  %v3448_v34 = vld [vmem:[#allocation8 + $0x4c] ss:$16 sps:$4 sm:$0xff]  }
  0x3f   : > { %961 = vmatpush1.bf16.msra.mxu0 %v3375_v10  ;;  %v2788_v32 = vld [vmem:[%s3357_s25 + $0x18] sm:$0xff]   ;;  %v3454_v36 = vld [vmem:[#allocation8 + $0x4] ss:$16 sps:$4 sm:$0xff]   ;;  %v3464_v38 = vld [vmem:[#allocation8] ss:$16 sps:$4 sm:$0xff]   ;;  %v365_v56 = vsub.s32 2, %v356_v50 }
  0x40   : > { %962 = vmatprep.subr.bf16.mxu0 %v3379_v11  ;;  %v3452_v35 = vld [vmem:[#allocation8 + $0x48] ss:$16 sps:$4 sm:$0xff]   ;;  %v3458_v37 = vld [vmem:[#allocation8 + $0x2c] ss:$16 sps:$4 sm:$0xff]   ;;  %v2795_v40 = vld [vmem:[%s3357_s25 + $0x20] sm:$0xff]   ;;  %v361_v60 = vsub.s32 1, %v356_v50 }
  0x41   : > { %1004 = vmatpush1.bf16.msra.mxu1 %v3396_v18  ;;  %v3468_v39 = vld [vmem:[#allocation8 + $0x28] ss:$16 sps:$4 sm:$0xff]   ;;  %v3473_v41 = vld [vmem:[#allocation8 + $0xc] ss:$16 sps:$4 sm:$0xff]   ;;  %v2809_v44 = vld [vmem:[%s3357_s25 + $0x30] sm:$0xff]   ;;  %v369_v61 = vsub.s32 3, %v356_v50 }
  0x42   : > { %2543 = vmatmul.mubr.msk.bf16.gmra.mxu0 %vm435_vm0, %v2777_v14  ;;  %2551 = vmatmul.mubr.msk.bf16.gmra.mxu1 %vm435_vm0, %v2777_v14  ;;  %v3476_v42 = vld [vmem:[#allocation8 + $0x8] ss:$16 sps:$4 sm:$0xff]   ;;  %v782_v46 = vld [vmem:[#allocation3] sm:$0xff] }
  0x43   : > { %512 = vmatprep.mubr.bf16.mxu0 %v4203_v3  ;;  %625 = vmatprep.mubr.bf16.mxu1 %v4203_v3  ;;  %v2802_v43 = vld [vmem:[%s3357_s25 + $0x28] sm:$0xff]   ;;  %v2819_v45 = vld [vmem:[%s3357_s25 + $0x38] sm:$0xff]   ;;  %v353_v57 = vld [vmem:[%s4197_s3] sm:$0xf] }
  0x44   : > { %963 = vmatpush1.bf16.msra.mxu0 %v3387_v15  ;;  %1005 = vmatprep.subr.bf16.mxu1 %v3408_v21  ;;  %v783_v47 = vld [vmem:[#allocation3 + $0x8] sm:$0xff]  ;;  %v3554_v0 = vrot.slane %v353_v57, %v357_v55  ;;  %v3556_v1 = vrot.slane %v353_v57, %v365_v56  ;;  %v3558_v5 = vrot.slane %v353_v57, %v361_v60 }
  0x45   : > { %964 = vmatprep.subr.bf16.mxu0 %v3392_v16  ;;  %1006 = vmatpush1.bf16.msra.mxu1 %v3412_v22  ;;  %v797_v48 = vpack.c.bf16 %v783_v47, %v782_v46  ;;  %v3560_v6 = vrot.slane %v353_v57, %v369_v61 }
  0x46   : > { %1007 = vmatprep.subr.bf16.mxu1 %v3421_v26 }
  0x48   : > { %965 = vmatpush1.bf16.msra.mxu0 %v3402_v19 }
  0x49   : > { %966 = vmatprep.subr.bf16.mxu0 %v3404_v20  ;;  %1008 = vmatpush1.bf16.msra.mxu1 %v3425_v27 }
  0x4a   : > { %2544 = vmatmul.mubr.msk.bf16.gmra.mxu0 %vm435_vm0, %v2781_v23  ;;  %2552 = vmatmul.mubr.msk.bf16.gmra.mxu1 %vm435_vm0, %v2781_v23 }
  0x4b   : > { %522 = vmatprep.mubr.bf16.mxu0 %v4203_v3  ;;  %635 = vmatprep.mubr.bf16.mxu1 %v4203_v3 }
  0x4c   : > { %967 = vmatpush1.bf16.msra.mxu0 %v3416_v24  ;;  %1009 = vmatprep.subr.bf16.mxu1 %v3431_v28 }
  0x4d   : > { %968 = vmatprep.subr.bf16.mxu0 %v3419_v25  ;;  %1010 = vmatpush1.bf16.msra.mxu1 %v3441_v31 }
  0x4e   : > { %1011 = vmatprep.subr.bf16.mxu1 %v3448_v34 }
  0x50   : > { %969 = vmatpush1.bf16.msra.mxu0 %v3434_v29 }
  0x51   : > { %970 = vmatprep.subr.bf16.mxu0 %v3439_v30  ;;  %1012 = vmatpush1.bf16.msra.mxu1 %v3452_v35 }
  0x52   : > { %2545 = vmatmul.mubr.msk.bf16.gmra.mxu0 %vm435_vm0, %v2788_v32  ;;  %2553 = vmatmul.mubr.msk.bf16.gmra.mxu1 %vm435_vm0, %v2788_v32 }
  0x53   : > { %532 = vmatprep.mubr.bf16.mxu0 %v4203_v3  ;;  %645 = vmatprep.mubr.bf16.mxu1 %v4203_v3 }
  0x54   : > { %971 = vmatpush1.bf16.msra.mxu0 %v3445_v33  ;;  %1013 = vmatprep.subr.bf16.mxu1 %v3458_v37 }
  0x55   : > { %972 = vmatprep.subr.bf16.mxu0 %v3454_v36  ;;  %1014 = vmatpush1.bf16.msra.mxu1 %v3468_v39 }
  0x56   : > { %1015 = vmatprep.subr.bf16.mxu1 %v3473_v41 }
  0x58   : > { %973 = vmatpush1.bf16.msra.mxu0 %v3464_v38 }
  0x59   : > { %1112 = vmatprep.subr.bf16.mxu0 %v3364_v7  ;;  %1016 = vmatpush1.bf16.msra.mxu1 %v3476_v42 }
  0x5a   : > { %2546 = vmatmul.mubr.msk.bf16.gmra.mxu0 %vm435_vm0, %v2795_v40  ;;  %2554 = vmatmul.mubr.msk.bf16.gmra.mxu1 %vm435_vm0, %v2795_v40 }
  0x5b   : > { %542 = vmatprep.mubr.bf16.mxu0 %v4203_v3  ;;  %655 = vmatprep.mubr.bf16.mxu1 %v4203_v3 }
  0x5c   : > { %1155 = vmatprep.subr.bf16.mxu1 %v3381_v12 }
  0x62   : > { %2547 = vmatmul.mubr.msk.bf16.gmra.mxu0 %vm435_vm0, %v2802_v43  ;;  %2555 = vmatmul.mubr.msk.bf16.gmra.mxu1 %vm435_vm0, %v2802_v43 }
  0x63   : > { %552 = vmatprep.mubr.bf16.mxu0 %v4203_v3  ;;  %665 = vmatprep.mubr.bf16.mxu1 %v4203_v3 }
  0x6a   : > { %2548 = vmatmul.mubr.msk.bf16.gmra.mxu0 %vm435_vm0, %v2809_v44  ;;  %2556 = vmatmul.mubr.msk.bf16.gmra.mxu1 %vm435_vm0, %v2809_v44 }
  0x6b   : > { %562 = vmatprep.mubr.bf16.mxu0 %v4203_v3  ;;  %675 = vmatprep.mubr.bf16.mxu1 %v4203_v3 }
  0x72   : > { %2549 = vmatmul.mubr.msk.bf16.gmra.mxu0 %vm435_vm0, %v2819_v45  ;;  %2557 = vmatmul.mubr.msk.bf16.gmra.mxu1 %vm435_vm0, %v2819_v45 }
  0x73   : > { %990 = vmatprep.mubr.bf16.mxu0 %v4203_v3  ;;  %1033 = vmatprep.mubr.bf16.mxu1 %v4203_v3 }
  0x7a   : > { %991 = vmatmul.mubr.bf16.vlgmr.msra.gmra.mxu0 %v797_v48  ;;  %1034 = vmatmul.mubr.bf16.vlgmr.msra.gmra.mxu1 %v797_v48 }
  0x7b   : > { %1113 = vmatpush1.bf16.msra.mxu0 %v3366_v8  ;;  %1156 = vmatpush1.bf16.msra.mxu1 %v3383_v13 }
  0x7c   : > { %1114 = vmatprep.subr.bf16.mxu0 %v3369_v9  ;;  %1157 = vmatprep.subr.bf16.mxu1 %v3394_v17 }
  0x7d   : > { %1144 = vmatprep.mubr.bf16.mxu0 %v4203_v3  ;;  %1187 = vmatprep.mubr.bf16.mxu1 %v4203_v3 }
  0x7f   : > { %1115 = vmatpush1.bf16.msra.mxu0 %v3375_v10  ;;  %1158 = vmatpush1.bf16.msra.mxu1 %v3396_v18 }
  0x80   : > { %1116 = vmatprep.subr.bf16.mxu0 %v3379_v11  ;;  %1159 = vmatprep.subr.bf16.mxu1 %v3408_v21 }
  0x83   : > { %1117 = vmatpush1.bf16.msra.mxu0 %v3387_v15  ;;  %1160 = vmatpush1.bf16.msra.mxu1 %v3412_v22 }
  0x84   : > { %1118 = vmatprep.subr.bf16.mxu0 %v3392_v16  ;;  %1161 = vmatprep.subr.bf16.mxu1 %v3421_v26 }
  0x87   : > { %1119 = vmatpush1.bf16.msra.mxu0 %v3402_v19  ;;  %1162 = vmatpush1.bf16.msra.mxu1 %v3425_v27 }
  0x88   : > { %1120 = vmatprep.subr.bf16.mxu0 %v3404_v20  ;;  %1163 = vmatprep.subr.bf16.mxu1 %v3431_v28 }
  0x8b   : > { %1121 = vmatpush1.bf16.msra.mxu0 %v3416_v24  ;;  %1164 = vmatpush1.bf16.msra.mxu1 %v3441_v31 }
  0x8c   : > { %1122 = vmatprep.subr.bf16.mxu0 %v3419_v25  ;;  %1165 = vmatprep.subr.bf16.mxu1 %v3448_v34 }
  0x8f   : > { %1123 = vmatpush1.bf16.msra.mxu0 %v3434_v29  ;;  %1166 = vmatpush1.bf16.msra.mxu1 %v3452_v35 }
  0x90   : > { %1124 = vmatprep.subr.bf16.mxu0 %v3439_v30  ;;  %1167 = vmatprep.subr.bf16.mxu1 %v3458_v37 }
  0x93   : > { %1125 = vmatpush1.bf16.msra.mxu0 %v3445_v33  ;;  %1168 = vmatpush1.bf16.msra.mxu1 %v3468_v39 }
  0x94   : > { %1126 = vmatprep.subr.bf16.mxu0 %v3454_v36  ;;  %1169 = vmatprep.subr.bf16.mxu1 %v3473_v41 }
  0x97   : > { %1127 = vmatpush1.bf16.msra.mxu0 %v3464_v38  ;;  %1170 = vmatpush1.bf16.msra.mxu1 %v3476_v42 }
  0x98   : > { %1266 = vmatprep.subr.bf16.mxu0 %v3364_v7  ;;  %1309 = vmatprep.subr.bf16.mxu1 %v3381_v12 }
  0xfa   : > { %v3535_v51 = vpop.f32.mrf.mxu0  ;;  %v3537_v52 = vpop.f32.mrf.mxu1 }
  0xfc   : > { %v3539_v53 = vpop.f32.mrf.mxu0  ;;  %v3541_v54 = vpop.f32.mrf.mxu1 }
  0xfe   : > { %v3546_v58 = vpop.f32.mrf.mxu0  ;;  %v3548_v59 = vpop.f32.mrf.mxu1 }
 0x100   : > { %v3550_v62 = vpop.f32.mrf.mxu0  ;;  %v3552_v63 = vpop.f32.mrf.mxu1 }
 0x102   : > { %v504_v2 = vpop.f32.mrf.mxu0  ;;  %v617_v4 = vpop.f32.mrf.mxu1 }
 0x103   : > { %v3563_v14 = vadd.f32 %v504_v2, %v3554_v0  ;;  %v3566_v23 = vadd.f32 %v617_v4, %v3556_v1 }
 0x104   : > { %v506_v32 = vpop.f32.mrf.mxu0  ;;  %v619_v40 = vpop.f32.mrf.mxu1 }
 0x105   : > { %v3569_v43 = vadd.f32 %v506_v32, %v3558_v5  ;;  %v3572_v44 = vadd.f32 %v619_v40, %v3560_v6 }
 0x106   : > { %v508_v45 = vpop.f32.mrf.mxu0  ;;  %v621_v46 = vpop.f32.mrf.mxu1 }
 0x107   : > { %4208 = vst [vmem:[#allocation14_spill] sm:$0xff] %v3572_v44  ;;  %v3575_v47 = vadd.f32 %v508_v45, %v3554_v0  ;;  %v3578_v48 = vadd.f32 %v621_v46, %v3556_v1 }
 0x108   : > { %v510_v49 = vpop.f32.mrf.mxu0  ;;  %v623_v50 = vpop.f32.mrf.mxu1 }
 0x109   : > { %4209 = vst [vmem:[#allocation15_spill] sm:$0xff] %v3578_v48  ;;  %v3581_v55 = vadd.f32 %v510_v49, %v3558_v5  ;;  %v3584_v56 = vadd.f32 %v623_v50, %v3560_v6 }
 0x10a   : > { %v514_v57 = vpop.f32.mrf.mxu0  ;;  %v627_v60 = vpop.f32.mrf.mxu1 }
 0x10b   : > { %4210 = vst [vmem:[#allocation16_spill] sm:$0xff] %v3584_v56  ;;  %v3587_v61 = vadd.f32 %v514_v57, %v3554_v0  ;;  %v3590_v2 = vadd.f32 %v627_v60, %v3556_v1 }
 0x10c   : > { %v516_v4 = vpop.f32.mrf.mxu0  ;;  %v629_v32 = vpop.f32.mrf.mxu1 }
 0x10d   : > { %4211 = vst [vmem:[#allocation17_spill] sm:$0xff] %v3587_v61  ;;  %4212 = vst [vmem:[#allocation18_spill] sm:$0xff] %v3590_v2  ;;  %v3593_v40 = vadd.f32 %v516_v4, %v3558_v5  ;;  %v3596_v45 = vadd.f32 %v629_v32, %v3560_v6 }
 0x10e   : > { %v518_v46 = vpop.f32.mrf.mxu0  ;;  %v631_v49 = vpop.f32.mrf.mxu1 }
 0x10f   : > { %4213 = vst [vmem:[#allocation19_spill] sm:$0xff] %v3593_v40  ;;  %4214 = vst [vmem:[#allocation20_spill] sm:$0xff] %v3596_v45  ;;  %v3599_v50 = vadd.f32 %v518_v46, %v3554_v0  ;;  %v3602_v3 = vadd.f32 %v631_v49, %v3556_v1 }
 0x110   : > { %v520_v57 = vpop.f32.mrf.mxu0  ;;  %v633_v61 = vpop.f32.mrf.mxu1 }
 0x111   : > { %4215 = vst [vmem:[#allocation21_spill] sm:$0xff] %v3599_v50  ;;  %4216 = vst [vmem:[#allocation22_spill] sm:$0xff] %v3602_v3  ;;  %v3605_v60 = vadd.f32 %v520_v57, %v3558_v5  ;;  %v3608_v2 = vadd.f32 %v633_v61, %v3560_v6 }
 0x112   : > { %v524_v4 = vpop.f32.mrf.mxu0  ;;  %v637_v40 = vpop.f32.mrf.mxu1 }
 0x113   : > { %4217 = vst [vmem:[#allocation23_spill] sm:$0xff] %v3605_v60  ;;  %4218 = vst [vmem:[#allocation24_spill] sm:$0xff] %v3608_v2  ;;  %v3611_v32 = vadd.f32 %v524_v4, %v3554_v0  ;;  %v3614_v45 = vadd.f32 %v637_v40, %v3556_v1 }
 0x114   : > { %v526_v46 = vpop.f32.mrf.mxu0  ;;  %v639_v50 = vpop.f32.mrf.mxu1 }
 0x115   : > { %4219 = vst [vmem:[#allocation25_spill] sm:$0xff] %v3611_v32  ;;  %4220 = vst [vmem:[#allocation26_spill] sm:$0xff] %v3614_v45  ;;  %v3617_v49 = vadd.f32 %v526_v46, %v3558_v5  ;;  %v3620_v3 = vadd.f32 %v639_v50, %v3560_v6 }
 0x116   : > { %v528_v57 = vpop.f32.mrf.mxu0  ;;  %v641_v60 = vpop.f32.mrf.mxu1 }
 0x117   : > { %4221 = vst [vmem:[#allocation27_spill] sm:$0xff] %v3617_v49  ;;  %4222 = vst [vmem:[#allocation28_spill] sm:$0xff] %v3620_v3  ;;  %v3623_v61 = vadd.f32 %v528_v57, %v3554_v0  ;;  %v3626_v2 = vadd.f32 %v641_v60, %v3556_v1 }
 0x118   : > { %v530_v4 = vpop.f32.mrf.mxu0  ;;  %v643_v32 = vpop.f32.mrf.mxu1 }
 0x119   : > { %4223 = vst [vmem:[#allocation29_spill] sm:$0xff] %v3623_v61  ;;  %4224 = vst [vmem:[#allocation30_spill] sm:$0xff] %v3626_v2  ;;  %v3629_v40 = vadd.f32 %v530_v4, %v3558_v5  ;;  %v3632_v45 = vadd.f32 %v643_v32, %v3560_v6 }
 0x11a   : > { %v534_v46 = vpop.f32.mrf.mxu0  ;;  %v647_v49 = vpop.f32.mrf.mxu1 }
 0x11b   : > { %4225 = vst [vmem:[#allocation31_spill] sm:$0xff] %v3629_v40  ;;  %4226 = vst [vmem:[#allocation32_spill] sm:$0xff] %v3632_v45  ;;  %v3635_v50 = vadd.f32 %v534_v46, %v3554_v0  ;;  %v3638_v3 = vadd.f32 %v647_v49, %v3556_v1 }
 0x11c   : > { %v536_v57 = vpop.f32.mrf.mxu0  ;;  %v649_v61 = vpop.f32.mrf.mxu1 }
 0x11d   : > { %4227 = vst [vmem:[#allocation33_spill] sm:$0xff] %v3635_v50  ;;  %4228 = vst [vmem:[#allocation34_spill] sm:$0xff] %v3638_v3  ;;  %v3641_v60 = vadd.f32 %v536_v57, %v3558_v5  ;;  %v3644_v2 = vadd.f32 %v649_v61, %v3560_v6 }
 0x11e   : > { %v538_v4 = vpop.f32.mrf.mxu0  ;;  %v651_v40 = vpop.f32.mrf.mxu1 }
 0x11f   : > { %4229 = vst [vmem:[#allocation35_spill] sm:$0xff] %v3641_v60  ;;  %4230 = vst [vmem:[#allocation36_spill] sm:$0xff] %v3644_v2  ;;  %v3647_v32 = vadd.f32 %v538_v4, %v3554_v0  ;;  %v3650_v45 = vadd.f32 %v651_v40, %v3556_v1 }
 0x120   : > { %v540_v46 = vpop.f32.mrf.mxu0  ;;  %v653_v50 = vpop.f32.mrf.mxu1 }
 0x121   : > { %4231 = vst [vmem:[#allocation37_spill] sm:$0xff] %v3647_v32  ;;  %4232 = vst [vmem:[#allocation38_spill] sm:$0xff] %v3650_v45  ;;  %v3653_v49 = vadd.f32 %v540_v46, %v3558_v5  ;;  %v3656_v3 = vadd.f32 %v653_v50, %v3560_v6 }
 0x122   : > { %v544_v57 = vpop.f32.mrf.mxu0  ;;  %v657_v60 = vpop.f32.mrf.mxu1 }
 0x123   : > { %4233 = vst [vmem:[#allocation39_spill] sm:$0xff] %v3653_v49  ;;  %4234 = vst [vmem:[#allocation40_spill] sm:$0xff] %v3656_v3  ;;  %v3659_v61 = vadd.f32 %v544_v57, %v3554_v0  ;;  %v3662_v2 = vadd.f32 %v657_v60, %v3556_v1 }
 0x124   : > { %v546_v4 = vpop.f32.mrf.mxu0  ;;  %v659_v32 = vpop.f32.mrf.mxu1 }
 0x125   : > { %4235 = vst [vmem:[#allocation41_spill] sm:$0xff] %v3659_v61  ;;  %4236 = vst [vmem:[#allocation42_spill] sm:$0xff] %v3662_v2  ;;  %v3665_v40 = vadd.f32 %v546_v4, %v3558_v5  ;;  %v3668_v45 = vadd.f32 %v659_v32, %v3560_v6 }
 0x126   : > { %v548_v46 = vpop.f32.mrf.mxu0  ;;  %v661_v49 = vpop.f32.mrf.mxu1 }
 0x127   : > { %4237 = vst [vmem:[#allocation43_spill] sm:$0xff] %v3665_v40  ;;  %4238 = vst [vmem:[#allocation44_spill] sm:$0xff] %v3668_v45  ;;  %v3671_v50 = vadd.f32 %v548_v46, %v3554_v0  ;;  %v3674_v3 = vadd.f32 %v661_v49, %v3556_v1 }
 0x128   : > { %v550_v57 = vpop.f32.mrf.mxu0  ;;  %v663_v61 = vpop.f32.mrf.mxu1 }
 0x129   : > { %4239 = vst [vmem:[#allocation45_spill] sm:$0xff] %v3671_v50  ;;  %4240 = vst [vmem:[#allocation46_spill] sm:$0xff] %v3674_v3  ;;  %v3677_v60 = vadd.f32 %v550_v57, %v3558_v5  ;;  %v3680_v2 = vadd.f32 %v663_v61, %v3560_v6 }
 0x12a   : > { %v554_v4 = vpop.f32.mrf.mxu0  ;;  %v667_v40 = vpop.f32.mrf.mxu1 }
 0x12b   : > { %4241 = vst [vmem:[#allocation47_spill] sm:$0xff] %v3677_v60  ;;  %4242 = vst [vmem:[#allocation48_spill] sm:$0xff] %v3680_v2  ;;  %v3683_v32 = vadd.f32 %v554_v4, %v3554_v0  ;;  %v3686_v45 = vadd.f32 %v667_v40, %v3556_v1 }
 0x12c   : > { %v556_v46 = vpop.f32.mrf.mxu0  ;;  %v669_v50 = vpop.f32.mrf.mxu1 }
 0x12d   : > { %4243 = vst [vmem:[#allocation49_spill] sm:$0xff] %v3683_v32  ;;  %4244 = vst [vmem:[#allocation50_spill] sm:$0xff] %v3686_v45  ;;  %v3689_v49 = vadd.f32 %v556_v46, %v3558_v5  ;;  %v3692_v3 = vadd.f32 %v669_v50, %v3560_v6 }
 0x12e   : > { %v558_v57 = vpop.f32.mrf.mxu0  ;;  %v671_v60 = vpop.f32.mrf.mxu1 }
 0x12f   : > { %4245 = vst [vmem:[#allocation51_spill] sm:$0xff] %v3689_v49  ;;  %4246 = vst [vmem:[#allocation52_spill] sm:$0xff] %v3692_v3  ;;  %v3695_v61 = vadd.f32 %v558_v57, %v3554_v0  ;;  %v3698_v2 = vadd.f32 %v671_v60, %v3556_v1 }
 0x130   : > { %v560_v4 = vpop.f32.mrf.mxu0  ;;  %v673_v32 = vpop.f32.mrf.mxu1 }
 0x131   : > { %4247 = vst [vmem:[#allocation53_spill] sm:$0xff] %v3695_v61  ;;  %4248 = vst [vmem:[#allocation54_spill] sm:$0xff] %v3698_v2  ;;  %v3701_v40 = vadd.f32 %v560_v4, %v3558_v5  ;;  %v3704_v45 = vadd.f32 %v673_v32, %v3560_v6 }
 0x132   : > { %v564_v46 = vpop.f32.mrf.mxu0  ;;  %v677_v49 = vpop.f32.mrf.mxu1 }
 0x133   : > { %4249 = vst [vmem:[#allocation55_spill] sm:$0xff] %v3701_v40  ;;  %4250 = vst [vmem:[#allocation56_spill] sm:$0xff] %v3704_v45  ;;  %v3707_v50 = vadd.f32 %v564_v46, %v3554_v0  ;;  %v3710_v3 = vadd.f32 %v677_v49, %v3556_v1  ;;  %v495_v49 = vadd.f32 %v3535_v51, %v3554_v0 }
 0x134   : > { %v566_v57 = vpop.f32.mrf.mxu0  ;;  %v679_v61 = vpop.f32.mrf.mxu1  ;;  %v501_v51 = vadd.f32 %v3550_v62, %v3558_v5  ;;  %v612_v62 = vadd.f32 %v3548_v59, %v3556_v1 }
 0x135   : > { %4251 = vst [vmem:[#allocation57_spill] sm:$0xff] %v3707_v50  ;;  %4252 = vst [vmem:[#allocation58_spill] sm:$0xff] %v3710_v3  ;;  %v3713_v60 = vadd.f32 %v566_v57, %v3558_v5  ;;  %v3716_v2 = vadd.f32 %v679_v61, %v3560_v6 }
 0x136   : > { %v568_v4 = vpop.f32.mrf.mxu0  ;;  %v681_v40 = vpop.f32.mrf.mxu1 }
 0x137   : > { %4253 = vst [vmem:[#allocation59_spill] sm:$0xff] %v3713_v60  ;;  %4254 = vst [vmem:[#allocation60_spill] sm:$0xff] %v3716_v2  ;;  %v3719_v32 = vadd.f32 %v568_v4, %v3554_v0  ;;  %v3722_v45 = vadd.f32 %v681_v40, %v3556_v1  ;;  %v497_v2 = vadd.f32 %v3539_v53, %v3558_v5 }
 0x138   : > { %v570_v46 = vpop.f32.mrf.mxu0  ;;  %v683_v50 = vpop.f32.mrf.mxu1  ;;  %v499_v40 = vadd.f32 %v3546_v58, %v3554_v0  ;;  %v608_v58 = vadd.f32 %v3537_v52, %v3556_v1 }
 0x139   : > { %4255 = vst [vmem:[#allocation61_spill] sm:$0xff] %v3719_v32  ;;  %4256 = vst [vmem:[#allocation62_spill] sm:$0xff] %v3722_v45  ;;  %v3727_v3 = vadd.f32 %v570_v46, %v3558_v5  ;;  %v3730_v57 = vadd.f32 %v683_v50, %v3560_v6 }
 0x13a   : > { %v992_v61 = vpop.f32.mrf.mxu0  ;;  %v1035_v46 = vpop.f32.mrf.mxu1 }
 0x13b   : > { %4257 = vst [vmem:[#allocation63_spill] sm:$0xff] %v3727_v3  ;;  %4258 = vst [vmem:[#allocation64_spill] sm:$0xff] %v3730_v57  ;;  %v1044_v4 = vadd.f32 %v992_v61, %v495_v49  ;;  %v1046_v5 = vadd.f32 %v1035_v46, %v608_v58 }
 0x13c   : > { %v994_v32 = vpop.f32.mrf.mxu0  ;;  %v1037_v53 = vpop.f32.mrf.mxu1 }
 0x13d   : > { %v2590_v45 = vmul.f32 -1.442695, %v1044_v4  ;;  %v1045_v60 = vadd.f32 %v994_v32, %v497_v2  ;;  %v610_v2 = vadd.f32 %v3541_v54, %v3560_v6 }
 0x13e   : > { %v996_v56 = vpop.f32.mrf.mxu0  ;;  %v1039_v0 = vpop.f32.mrf.mxu1 }
 0x13f   : > { %2829 = vpow2.f32 %v2590_v45  ;;  %v2591_v3 = vmul.f32 -1.442695, %v1045_v60  ;;  %v1048_v50 = vadd.f32 %v996_v56, %v499_v40  ;;  %v1047_v56 = vadd.f32 %v1037_v53, %v610_v2 }
 0x140   : > { %v998_v57 = vpop.f32.mrf.mxu0  ;;  %v1050_v45 = vadd.f32 %v1039_v0, %v612_v62  ;;  %v2592_v60 = vmul.f32 -1.442695, %v1046_v5  ;;  %v785_v62 = vld [vmem:[#allocation4] sm:$0xff] }
 0x141   : > { %2831 = vpow2.f32 %v2591_v3  ;;  %v2593_v44 = vmul.f32 -1.442695, %v1048_v50  ;;  %v1049_v48 = vadd.f32 %v998_v57, %v501_v51  ;;  %v1041_v57 = vpop.f32.mrf.mxu1  ;;  %v784_v50 = vld [vmem:[#allocation4 + $0x8] sm:$0xff] }
 0x142   : > { %v2595_v52 = vmul.f32 -1.442695, %v1050_v45 }
 0x143   : > { %2833 = vpow2.f32 %v2593_v44  ;;  %v2594_v49 = vmul.f32 -1.442695, %v1049_v48  ;;  %v614_v48 = vadd.f32 %v3552_v63, %v3560_v6 }
 0x145   : > { %2835 = vpow2.f32 %v2594_v49  ;;  %v1051_v54 = vadd.f32 %v1041_v57, %v614_v48 }
 0x146   : > { %2837 = vtanh.f32 %v1047_v56 }
 0x14c   : > { %v2830_v3 = vpop.eup %2829 }
 0x14d   : > { %v1070_v32 = vadd.f32 1.0, %v2830_v3 }
 0x14e   : > { %v2832_v44 = vpop.eup %2831 }
 0x14f   : > { %2839 = vrcp.f32 %v1070_v32  ;;  %v1071_v61 = vadd.f32 1.0, %v2832_v44 }
 0x150   : > { %v2834_v4 = vpop.eup %2833  ;;  %2841 = vpow2.f32 %v2592_v60 }
 0x151   : > { %2843 = vrcp.f32 %v1071_v61  ;;  %v1073_v59 = vadd.f32 1.0, %v2834_v4 }
 0x152   : > { %v2836_v1 = vpop.eup %2835  ;;  %2845 = vpow2.f32 %v2595_v52 }
 0x153   : > { %2847 = vrcp.f32 %v1073_v59  ;;  %v1074_v40 = vadd.f32 1.0, %v2836_v1  ;;  %v2838_v51 = vpop.eup %2837  ;;  %v4259_v1 = vmov 0  }
 0x154   : > { %2849 = vtanh.f32 %v1051_v54 }
 0x155   : > { %2851 = vrcp.f32 %v1074_v40 }
 0x15c   : > { %v2840_v46 = vpop.eup %2839 }
 0x15d   : > { %v2842_v53 = vpop.eup %2841  ;;  %v1092_v63 = vmul.f32 %v2840_v46, %v2838_v51 }
 0x15e   : > { %v2844_v6 = vpop.eup %2843  ;;  %v1072_v2 = vadd.f32 1.0, %v2842_v53 }
 0x15f   : > { %v2846_v49 = vpop.eup %2845  ;;  %v1090_v58 = vmul.f32 %v2844_v6, %v784_v50 }
 0x160   : > { %v2848_v0 = vpop.eup %2847  ;;  %v1075_v3 = vadd.f32 1.0, %v2846_v49  ;;  %2853 = vrcp.f32 %v1072_v2 }
 0x161   : > { %v2850_v5 = vpop.eup %2849  ;;  %v3746_v56 = vadd.f32 %v1092_v63, %v1090_v58 }
 0x162   : > { %v2852_v45 = vpop.eup %2851  ;;  %v1093_v32 = vmul.f32 %v2850_v5, %v2848_v0 }
 0x163   : > { %v1091_v60 = vmul.f32 %v2852_v45, %v785_v62  ;;  %2855 = vtanh.f32 %v3746_v56  ;;  %v4260_v45 = vld [vmem:[#allocation15_spill] sm:$0xff] }
 0x164   : > { %2857 = vrcp.f32 %v1075_v3 }
 0x165   : > { %v3749_v57 = vadd.f32 %v1093_v32, %v1091_v60  ;;  %v4261_v60 = vld [vmem:[#allocation14_spill] sm:$0xff] }
 0x167   : > { %2859 = vtanh.f32 %v3749_v57 }
 0x16d   : > { %v2854_v44 = vpop.eup %2853 }
 0x170   : > { %v2856_v48 = vpop.eup %2855 }
 0x171   : > { %v2858_v52 = vpop.eup %2857  ;;  %v1098_v4 = vmul.f32 %v2856_v48, %v2854_v44 }
 0x174   : > { %v2860_v61 = vpop.eup %2859 }
 0x175   : > { %v1099_v54 = vmul.f32 %v2860_v61, %v2858_v52 }
 0x177   : > { %v1111_v59 = vpack.c.bf16 %v1099_v54, %v1098_v4  ;;  %v4262_v4 = vld [vmem:[#allocation16_spill] sm:$0xff] }
 0x179   : > { %1145 = vmatmul.mubr.bf16.vlgmr.msra.gmra.mxu0 %v1111_v59  ;;  %1188 = vmatmul.mubr.bf16.vlgmr.msra.gmra.mxu1 %v1111_v59 }
 0x17a   : > { %1267 = vmatpush1.bf16.msra.mxu0 %v3366_v8  ;;  %1310 = vmatpush1.bf16.msra.mxu1 %v3383_v13 }
 0x17b   : > { %1268 = vmatprep.subr.bf16.mxu0 %v3369_v9  ;;  %1311 = vmatprep.subr.bf16.mxu1 %v3394_v17 }
 0x17c   : > { %1298 = vmatprep.mubr.bf16.mxu0 %v4259_v1  ;;  %1341 = vmatprep.mubr.bf16.mxu1 %v4259_v1 }
 0x17e   : > { %1269 = vmatpush1.bf16.msra.mxu0 %v3375_v10  ;;  %1312 = vmatpush1.bf16.msra.mxu1 %v3396_v18 }
 0x17f   : > { %1270 = vmatprep.subr.bf16.mxu0 %v3379_v11  ;;  %1313 = vmatprep.subr.bf16.mxu1 %v3408_v21 }
 0x182   : > { %1271 = vmatpush1.bf16.msra.mxu0 %v3387_v15  ;;  %1314 = vmatpush1.bf16.msra.mxu1 %v3412_v22 }
 0x183   : > { %1272 = vmatprep.subr.bf16.mxu0 %v3392_v16  ;;  %1315 = vmatprep.subr.bf16.mxu1 %v3421_v26 }
 0x186   : > { %1273 = vmatpush1.bf16.msra.mxu0 %v3402_v19  ;;  %1316 = vmatpush1.bf16.msra.mxu1 %v3425_v27 }
 0x187   : > { %1274 = vmatprep.subr.bf16.mxu0 %v3404_v20  ;;  %1317 = vmatprep.subr.bf16.mxu1 %v3431_v28 }
 0x18a   : > { %1275 = vmatpush1.bf16.msra.mxu0 %v3416_v24  ;;  %1318 = vmatpush1.bf16.msra.mxu1 %v3441_v31 }
 0x18b   : > { %1276 = vmatprep.subr.bf16.mxu0 %v3419_v25  ;;  %1319 = vmatprep.subr.bf16.mxu1 %v3448_v34 }
 0x18e   : > { %1277 = vmatpush1.bf16.msra.mxu0 %v3434_v29  ;;  %1320 = vmatpush1.bf16.msra.mxu1 %v3452_v35 }
 0x18f   : > { %1278 = vmatprep.subr.bf16.mxu0 %v3439_v30  ;;  %1321 = vmatprep.subr.bf16.mxu1 %v3458_v37 }
 0x192   : > { %1279 = vmatpush1.bf16.msra.mxu0 %v3445_v33  ;;  %1322 = vmatpush1.bf16.msra.mxu1 %v3468_v39 }
 0x193   : > { %1280 = vmatprep.subr.bf16.mxu0 %v3454_v36  ;;  %1323 = vmatprep.subr.bf16.mxu1 %v3473_v41 }
 0x196   : > { %1281 = vmatpush1.bf16.msra.mxu0 %v3464_v38  ;;  %1324 = vmatpush1.bf16.msra.mxu1 %v3476_v42 }
 0x197   : > { %1420 = vmatprep.subr.bf16.mxu0 %v3364_v7  ;;  %1463 = vmatprep.subr.bf16.mxu1 %v3381_v12 }
 0x239   : > { %v1146_v40 = vpop.f32.mrf.mxu0  ;;  %v1189_v53 = vpop.f32.mrf.mxu1 }
 0x23a   : > { %v1198_v51 = vadd.f32 %v1146_v40, %v3563_v14  ;;  %v1200_v14 = vadd.f32 %v1189_v53, %v3566_v23 }
 0x23b   : > { %v1148_v46 = vpop.f32.mrf.mxu0  ;;  %v1191_v2 = vpop.f32.mrf.mxu1 }
 0x23c   : > { %v2596_v50 = vmul.f32 -1.442695, %v1198_v51  ;;  %v1199_v63 = vadd.f32 %v1148_v46, %v3569_v43  ;;  %v2598_v43 = vmul.f32 -1.442695, %v1200_v14  ;;  %v1201_v32 = vadd.f32 %v1191_v2, %v4261_v60 }
 0x23d   : > { %v1150_v6 = vpop.f32.mrf.mxu0  ;;  %v1193_v5 = vpop.f32.mrf.mxu1 }
 0x23e   : > { %2861 = vpow2.f32 %v2596_v50  ;;  %v2597_v49 = vmul.f32 -1.442695, %v1199_v63  ;;  %v1202_v58 = vadd.f32 %v1150_v6, %v3575_v47  ;;  %v1204_v3 = vadd.f32 %v1193_v5, %v4260_v45 }
 0x23f   : > { %v1152_v0 = vpop.f32.mrf.mxu0  ;;  %v1195_v44 = vpop.f32.mrf.mxu1 }
 0x240   : > { %2863 = vpow2.f32 %v2597_v49  ;;  %v2599_v62 = vmul.f32 -1.442695, %v1202_v58  ;;  %v1203_v7 = vadd.f32 %v1152_v0, %v3581_v55  ;;  %v2601_v47 = vmul.f32 -1.442695, %v1204_v3 }
 0x241   : > { %v1205_v55 = vadd.f32 %v1195_v44, %v4262_v4  ;;  %v4270_v4 = vld [vmem:[#allocation24_spill] sm:$0xff] }
 0x242   : > { %2865 = vpow2.f32 %v2599_v62  ;;  %v2600_v12 = vmul.f32 -1.442695, %v1203_v7 }
 0x244   : > { %2867 = vpow2.f32 %v2600_v12 }
 0x245   : > { %2869 = vpow2.f32 %v2598_v43 }
 0x246   : > { %2871 = vtanh.f32 %v1201_v32 }
 0x24b   : > { %v2862_v48 = vpop.eup %2861 }
 0x24c   : > { %v1224_v52 = vadd.f32 1.0, %v2862_v48 }
 0x24d   : > { %v2864_v61 = vpop.eup %2863 }
 0x24e   : > { %2873 = vrcp.f32 %v1224_v52  ;;  %v1225_v54 = vadd.f32 1.0, %v2864_v61 }
 0x24f   : > { %v2866_v59 = vpop.eup %2865  ;;  %2875 = vpow2.f32 %v2601_v47 }
 0x250   : > { %2877 = vrcp.f32 %v1225_v54  ;;  %v1227_v23 = vadd.f32 1.0, %v2866_v59 }
 0x251   : > { %v2868_v40 = vpop.eup %2867  ;;  %2879 = vtanh.f32 %v1205_v55 }
 0x252   : > { %2881 = vrcp.f32 %v1227_v23  ;;  %v1228_v51 = vadd.f32 1.0, %v2868_v40  ;;  %v2870_v46 = vpop.eup %2869 }
 0x253   : > { %v2872_v50 = vpop.eup %2871  ;;  %v1226_v62 = vadd.f32 1.0, %v2870_v46 }
 0x254   : > { %2883 = vrcp.f32 %v1228_v51 }
 0x255   : > { %2885 = vrcp.f32 %v1226_v62 }
 0x25b   : > { %v2874_v53 = vpop.eup %2873 }
 0x25c   : > { %v2876_v63 = vpop.eup %2875  ;;  %v1246_v6 = vmul.f32 %v2874_v53, %v2872_v50 }
 0x25d   : > { %v2878_v49 = vpop.eup %2877  ;;  %v1229_v5 = vadd.f32 1.0, %v2876_v63 }
 0x25e   : > { %v2880_v58 = vpop.eup %2879  ;;  %v1244_v0 = vmul.f32 %v2878_v49, %v3746_v56 }
 0x25f   : > { %v2882_v2 = vpop.eup %2881 }
 0x260   : > { %v3795_v7 = vadd.f32 %v1246_v6, %v1244_v0  ;;  %v1247_v12 = vmul.f32 %v2882_v2, %v2880_v58 }
 0x261   : > { %v2884_v14 = vpop.eup %2883 }
 0x262   : > { %v1245_v45 = vmul.f32 %v2884_v14, %v3749_v57  ;;  %2887 = vtanh.f32 %v3795_v7  ;;  %v2886_v43 = vpop.eup %2885 }
 0x263   : > { %2889 = vrcp.f32 %v1229_v5 }
 0x264   : > { %v3799_v3 = vadd.f32 %v1247_v12, %v1245_v45 }
 0x266   : > { %2891 = vtanh.f32 %v3799_v3 }
 0x26f   : > { %v2888_v60 = vpop.eup %2887 }
 0x270   : > { %v2890_v56 = vpop.eup %2889  ;;  %v1252_v44 = vmul.f32 %v2888_v60, %v2886_v43 }
 0x273   : > { %v2892_v32 = vpop.eup %2891 }
 0x274   : > { %v1253_v48 = vmul.f32 %v2892_v32, %v2890_v56 }
 0x276   : > { %v1265_v47 = vpack.c.bf16 %v1253_v48, %v1252_v44 }
 0x278   : > { %1299 = vmatmul.mubr.bf16.vlgmr.msra.gmra.mxu0 %v1265_v47  ;;  %1342 = vmatmul.mubr.bf16.vlgmr.msra.gmra.mxu1 %v1265_v47 }
 0x279   : > { %1421 = vmatpush1.bf16.msra.mxu0 %v3366_v8  ;;  %1464 = vmatpush1.bf16.msra.mxu1 %v3383_v13  ;;  %v3834_v8 = vld [vmem:[#allocation8 + $0xe4] ss:$16 sps:$4 sm:$0xff]  }
 0x27a   : > { %1422 = vmatprep.subr.bf16.mxu0 %v3369_v9  ;;  %1465 = vmatprep.subr.bf16.mxu1 %v3394_v17  ;;  %v3837_v9 = vld [vmem:[#allocation8 + $0xec] ss:$16 sps:$4 sm:$0xff]  }
 0x27b   : > { %1452 = vmatprep.mubr.bf16.mxu0 %v4259_v1  ;;  %1495 = vmatprep.mubr.bf16.mxu1 %v4259_v1 }
 0x27d   : > { %1423 = vmatpush1.bf16.msra.mxu0 %v3375_v10  ;;  %1466 = vmatpush1.bf16.msra.mxu1 %v3396_v18  ;;  %v4264_v18 = vld [vmem:[#allocation19_spill] sm:$0xff] }
 0x27e   : > { %1424 = vmatprep.subr.bf16.mxu0 %v3379_v11  ;;  %1467 = vmatprep.subr.bf16.mxu1 %v3408_v21  ;;  %v4263_v11 = vld [vmem:[#allocation17_spill] sm:$0xff] }
 0x281   : > { %1425 = vmatpush1.bf16.msra.mxu0 %v3387_v15  ;;  %1468 = vmatpush1.bf16.msra.mxu1 %v3412_v22  ;;  %v4265_v22 = vld [vmem:[#allocation21_spill] sm:$0xff] }
 0x282   : > { %1426 = vmatprep.subr.bf16.mxu0 %v3392_v16  ;;  %1469 = vmatprep.subr.bf16.mxu1 %v3421_v26 }
 0x285   : > { %1427 = vmatpush1.bf16.msra.mxu0 %v3402_v19  ;;  %1470 = vmatpush1.bf16.msra.mxu1 %v3425_v27 }
 0x286   : > { %1428 = vmatprep.subr.bf16.mxu0 %v3404_v20  ;;  %1471 = vmatprep.subr.bf16.mxu1 %v3431_v28  ;;  %v4266_v28 = vld [vmem:[#allocation23_spill] sm:$0xff] }
 0x289   : > { %1429 = vmatpush1.bf16.msra.mxu0 %v3416_v24  ;;  %1472 = vmatpush1.bf16.msra.mxu1 %v3441_v31  ;;  %v4267_v31 = vld [vmem:[#allocation18_spill] sm:$0xff] }
 0x28a   : > { %1430 = vmatprep.subr.bf16.mxu0 %v3419_v25  ;;  %1473 = vmatprep.subr.bf16.mxu1 %v3448_v34 }
 0x28d   : > { %1431 = vmatpush1.bf16.msra.mxu0 %v3434_v29  ;;  %1474 = vmatpush1.bf16.msra.mxu1 %v3452_v35  ;;  %v4268_v35 = vld [vmem:[#allocation22_spill] sm:$0xff] }
 0x28e   : > { %1432 = vmatprep.subr.bf16.mxu0 %v3439_v30  ;;  %1475 = vmatprep.subr.bf16.mxu1 %v3458_v37 }
 0x291   : > { %1433 = vmatpush1.bf16.msra.mxu0 %v3445_v33  ;;  %1476 = vmatpush1.bf16.msra.mxu1 %v3468_v39 }
 0x292   : > { %1434 = vmatprep.subr.bf16.mxu0 %v3454_v36  ;;  %1477 = vmatprep.subr.bf16.mxu1 %v3473_v41 }
 0x295   : > { %1435 = vmatpush1.bf16.msra.mxu0 %v3464_v38  ;;  %1478 = vmatpush1.bf16.msra.mxu1 %v3476_v42  ;;  %v4269_v38 = vld [vmem:[#allocation20_spill] sm:$0xff] }
 0x296   : > { %1574 = vmatprep.subr.bf16.mxu0 %v3834_v8  ;;  %1617 = vmatprep.subr.bf16.mxu1 %v3837_v9 }
 0x338   : > { %v1300_v10 = vpop.f32.mrf.mxu0  ;;  %v1343_v17 = vpop.f32.mrf.mxu1 }
 0x339   : > { %v1352_v13 = vadd.f32 %v1300_v10, %v4263_v11  ;;  %v1354_v33 = vadd.f32 %v1343_v17, %v4267_v31  ;;  %v3856_v11 = vld [vmem:[#allocation8 + $0xe0] ss:$16 sps:$4 sm:$0xff]   ;;  %v3873_v17 = vld [vmem:[#allocation8 + $0xc8] ss:$16 sps:$4 sm:$0xff]   ;;  %v3912_v31 = vld [vmem:[#allocation8 + $0x44] ss:$16 sps:$4 sm:$0xff]  }
 0x33a   : > { %v1302_v15 = vpop.f32.mrf.mxu0  ;;  %v1345_v26 = vpop.f32.mrf.mxu1 }
 0x33b   : > { %v2602_v16 = vmul.f32 -1.442695, %v1352_v13  ;;  %v1353_v19 = vadd.f32 %v1302_v15, %v4264_v18  ;;  %v2604_v37 = vmul.f32 -1.442695, %v1354_v33  ;;  %v1355_v39 = vadd.f32 %v1345_v26, %v4269_v38  ;;  %v3862_v13 = vld [vmem:[#allocation8 + $0xc4] ss:$16 sps:$4 sm:$0xff]  }
 0x33c   : > { %v1304_v20 = vpop.f32.mrf.mxu0  ;;  %v1347_v34 = vpop.f32.mrf.mxu1  ;;  %v3865_v15 = vld [vmem:[#allocation8 + $0xcc] ss:$16 sps:$4 sm:$0xff]   ;;  %v3876_v18 = vld [vmem:[#allocation8 + $0xa4] ss:$16 sps:$4 sm:$0xff]   ;;  %v3897_v26 = vld [vmem:[#allocation8 + $0x88] ss:$16 sps:$4 sm:$0xff]  }
 0x33d   : > { %2893 = vpow2.f32 %v2602_v16  ;;  %v2603_v21 = vmul.f32 -1.442695, %v1353_v19  ;;  %v1356_v24 = vadd.f32 %v1304_v20, %v4265_v22  ;;  %v1358_v36 = vadd.f32 %v1347_v34, %v4268_v35  ;;  %v3870_v16 = vld [vmem:[#allocation8 + $0xc0] ss:$16 sps:$4 sm:$0xff]   ;;  %v3879_v19 = vld [vmem:[#allocation8 + $0xac] ss:$16 sps:$4 sm:$0xff]  }
 0x33e   : > { %v1306_v25 = vpop.f32.mrf.mxu0  ;;  %v1349_v41 = vpop.f32.mrf.mxu1  ;;  %v3882_v20 = vld [vmem:[#allocation8 + $0xa0] ss:$16 sps:$4 sm:$0xff]   ;;  %v3888_v22 = vld [vmem:[#allocation8 + $0x84] ss:$16 sps:$4 sm:$0xff]   ;;  %v3915_v33 = vld [vmem:[#allocation8 + $0x4c] ss:$16 sps:$4 sm:$0xff]  }
 0x33f   : > { %2895 = vpow2.f32 %v2603_v21  ;;  %v2605_v27 = vmul.f32 -1.442695, %v1356_v24  ;;  %v1357_v29 = vadd.f32 %v1306_v25, %v4266_v28  ;;  %v2607_v57 = vmul.f32 -1.442695, %v1358_v36  ;;  %v3885_v21 = vld [vmem:[#allocation8 + $0xa8] ss:$16 sps:$4 sm:$0xff]  }
 0x340   : > { %v1359_v55 = vadd.f32 %v1349_v41, %v4270_v4  ;;  %v3891_v24 = vld [vmem:[#allocation8 + $0x8c] ss:$16 sps:$4 sm:$0xff]   ;;  %v3894_v25 = vld [vmem:[#allocation8 + $0x80] ss:$16 sps:$4 sm:$0xff]   ;;  %v3921_v35 = vld [vmem:[#allocation8 + $0x48] ss:$16 sps:$4 sm:$0xff]  }
 0x341   : > { %2897 = vpow2.f32 %v2605_v27  ;;  %v2606_v30 = vmul.f32 -1.442695, %v1357_v29  ;;  %v3900_v27 = vld [vmem:[#allocation8 + $0x64] ss:$16 sps:$4 sm:$0xff]   ;;  %v3903_v28 = vld [vmem:[#allocation8 + $0x6c] ss:$16 sps:$4 sm:$0xff]  }
 0x342   : > { %v3906_v29 = vld [vmem:[#allocation8 + $0x60] ss:$16 sps:$4 sm:$0xff]   ;;  %v3924_v36 = vld [vmem:[#allocation8 + $0x24] ss:$16 sps:$4 sm:$0xff]   ;;  %v4271_v4 = vld [vmem:[#allocation25_spill] sm:$0xff] }
 0x343   : > { %2899 = vpow2.f32 %v2606_v30  ;;  %v3909_v30 = vld [vmem:[#allocation8 + $0x68] ss:$16 sps:$4 sm:$0xff]   ;;  %v3918_v34 = vld [vmem:[#allocation8 + $0x40] ss:$16 sps:$4 sm:$0xff]   ;;  %v3936_v41 = vld [vmem:[#allocation8 + $0x4] ss:$16 sps:$4 sm:$0xff]  }
 0x344   : > { %2901 = vpow2.f32 %v2604_v37  ;;  %v3927_v37 = vld [vmem:[#allocation8 + $0x2c] ss:$16 sps:$4 sm:$0xff]   ;;  %v3930_v38 = vld [vmem:[#allocation8 + $0x20] ss:$16 sps:$4 sm:$0xff]  }
 0x345   : > { %2903 = vtanh.f32 %v1355_v39  ;;  %v3933_v39 = vld [vmem:[#allocation8 + $0x28] ss:$16 sps:$4 sm:$0xff]  }
 0x34a   : > { %v2894_v42 = vpop.eup %2893 }
 0x34b   : > { %v1378_v52 = vadd.f32 1.0, %v2894_v42  ;;  %v3939_v42 = vld [vmem:[#allocation8 + $0xc] ss:$16 sps:$4 sm:$0xff]  }
 0x34c   : > { %v2896_v61 = vpop.eup %2895 }
 0x34d   : > { %2905 = vrcp.f32 %v1378_v52  ;;  %v1379_v54 = vadd.f32 1.0, %v2896_v61  ;;  %v3945_v52 = vld [vmem:[#allocation8 + $0x8] ss:$16 sps:$4 sm:$0xff]  }
 0x34e   : > { %v2898_v59 = vpop.eup %2897  ;;  %2907 = vpow2.f32 %v2607_v57  ;;  %v3942_v57 = vld [vmem:[#allocation8] ss:$16 sps:$4 sm:$0xff]  }
 0x34f   : > { %2909 = vrcp.f32 %v1379_v54  ;;  %v1381_v23 = vadd.f32 1.0, %v2898_v59 }
 0x350   : > { %v2900_v40 = vpop.eup %2899  ;;  %2911 = vtanh.f32 %v1359_v55 }
 0x351   : > { %2913 = vrcp.f32 %v1381_v23  ;;  %v1382_v51 = vadd.f32 1.0, %v2900_v40  ;;  %v2902_v46 = vpop.eup %2901  ;;  %v4272_v40 = vld [vmem:[#allocation27_spill] sm:$0xff] }
 0x352   : > { %v2904_v50 = vpop.eup %2903  ;;  %v1380_v62 = vadd.f32 1.0, %v2902_v46 }
 0x353   : > { %2915 = vrcp.f32 %v1382_v51 }
 0x354   : > { %2917 = vrcp.f32 %v1380_v62 }
 0x35a   : > { %v2906_v53 = vpop.eup %2905 }
 0x35b   : > { %v2908_v63 = vpop.eup %2907  ;;  %v1400_v6 = vmul.f32 %v2906_v53, %v2904_v50  ;;  %v4273_v53 = vld [vmem:[#allocation29_spill] sm:$0xff] }
 0x35c   : > { %v2910_v49 = vpop.eup %2909  ;;  %v1383_v45 = vadd.f32 1.0, %v2908_v63 }
 0x35d   : > { %v2912_v58 = vpop.eup %2911  ;;  %v1398_v0 = vmul.f32 %v2910_v49, %v3795_v7 }
 0x35e   : > { %v2914_v2 = vpop.eup %2913 }
 0x35f   : > { %v3849_v12 = vadd.f32 %v1400_v6, %v1398_v0  ;;  %v1401_v14 = vmul.f32 %v2914_v2, %v2912_v58  ;;  %v4274_v0 = vld [vmem:[#allocation31_spill] sm:$0xff] }
 0x360   : > { %v2916_v5 = vpop.eup %2915 }
 0x361   : > { %v1399_v43 = vmul.f32 %v2916_v5, %v3799_v3  ;;  %2919 = vtanh.f32 %v3849_v12  ;;  %v2918_v56 = vpop.eup %2917  ;;  %v3859_v3 = vld [vmem:[#allocation8 + $0xe8] ss:$16 sps:$4 sm:$0xff]  }
 0x362   : > { %2921 = vrcp.f32 %v1383_v45 }
 0x363   : > { %v3853_v60 = vadd.f32 %v1401_v14, %v1399_v43  ;;  %v4275_v14 = vld [vmem:[#allocation26_spill] sm:$0xff] }
 0x364   : > { %v4276_v43 = vld [vmem:[#allocation30_spill] sm:$0xff] }
 0x365   : > { %2923 = vtanh.f32 %v3853_v60 }
 0x36e   : > { %v2920_v32 = vpop.eup %2919 }
 0x36f   : > { %v2922_v7 = vpop.eup %2921  ;;  %v1406_v48 = vmul.f32 %v2920_v32, %v2918_v56 }
 0x372   : > { %v2924_v44 = vpop.eup %2923 }
 0x373   : > { %v1407_v47 = vmul.f32 %v2924_v44, %v2922_v7  ;;  %v4277_v7 = vld [vmem:[#allocation28_spill] sm:$0xff] }
 0x375   : > { %v1419_v10 = vpack.c.bf16 %v1407_v47, %v1406_v48 }
 0x377   : > { %1453 = vmatmul.mubr.bf16.vlgmr.msra.gmra.mxu0 %v1419_v10  ;;  %1496 = vmatmul.mubr.bf16.vlgmr.msra.gmra.mxu1 %v1419_v10 }
 0x378   : > { %1575 = vmatpush1.bf16.msra.mxu0 %v3856_v11  ;;  %1618 = vmatpush1.bf16.msra.mxu1 %v3859_v3 }
 0x379   : > { %1576 = vmatprep.subr.bf16.mxu0 %v3862_v13  ;;  %1619 = vmatprep.subr.bf16.mxu1 %v3865_v15 }
 0x37a   : > { %1606 = vmatprep.mubr.bf16.mxu0 %v4259_v1  ;;  %1649 = vmatprep.mubr.bf16.mxu1 %v4259_v1 }
 0x37c   : > { %1577 = vmatpush1.bf16.msra.mxu0 %v3870_v16  ;;  %1620 = vmatpush1.bf16.msra.mxu1 %v3873_v17 }
 0x37d   : > { %1578 = vmatprep.subr.bf16.mxu0 %v3876_v18  ;;  %1621 = vmatprep.subr.bf16.mxu1 %v3879_v19 }
 0x380   : > { %1579 = vmatpush1.bf16.msra.mxu0 %v3882_v20  ;;  %1622 = vmatpush1.bf16.msra.mxu1 %v3885_v21 }
 0x381   : > { %1580 = vmatprep.subr.bf16.mxu0 %v3888_v22  ;;  %1623 = vmatprep.subr.bf16.mxu1 %v3891_v24 }
 0x384   : > { %1581 = vmatpush1.bf16.msra.mxu0 %v3894_v25  ;;  %1624 = vmatpush1.bf16.msra.mxu1 %v3897_v26 }
 0x385   : > { %1582 = vmatprep.subr.bf16.mxu0 %v3900_v27  ;;  %1625 = vmatprep.subr.bf16.mxu1 %v3903_v28 }
 0x388   : > { %1583 = vmatpush1.bf16.msra.mxu0 %v3906_v29  ;;  %1626 = vmatpush1.bf16.msra.mxu1 %v3909_v30 }
 0x389   : > { %1584 = vmatprep.subr.bf16.mxu0 %v3912_v31  ;;  %1627 = vmatprep.subr.bf16.mxu1 %v3915_v33 }
 0x38c   : > { %1585 = vmatpush1.bf16.msra.mxu0 %v3918_v34  ;;  %1628 = vmatpush1.bf16.msra.mxu1 %v3921_v35 }
 0x38d   : > { %1586 = vmatprep.subr.bf16.mxu0 %v3924_v36  ;;  %1629 = vmatprep.subr.bf16.mxu1 %v3927_v37 }
 0x390   : > { %1587 = vmatpush1.bf16.msra.mxu0 %v3930_v38  ;;  %1630 = vmatpush1.bf16.msra.mxu1 %v3933_v39 }
 0x391   : > { %1588 = vmatprep.subr.bf16.mxu0 %v3936_v41  ;;  %1631 = vmatprep.subr.bf16.mxu1 %v3939_v42 }
 0x394   : > { %1589 = vmatpush1.bf16.msra.mxu0 %v3942_v57  ;;  %1632 = vmatpush1.bf16.msra.mxu1 %v3945_v52 }
 0x395   : > { %1728 = vmatprep.subr.bf16.mxu0 %v3834_v8  ;;  %1771 = vmatprep.subr.bf16.mxu1 %v3837_v9 }
 0x437   : > { %v1454_v61 = vpop.f32.mrf.mxu0  ;;  %v1497_v23 = vpop.f32.mrf.mxu1 }
 0x438   : > { %v1506_v55 = vadd.f32 %v1454_v61, %v4271_v4  ;;  %v1508_v5 = vadd.f32 %v1497_v23, %v4275_v14 }
 0x439   : > { %v1456_v54 = vpop.f32.mrf.mxu0  ;;  %v1499_v49 = vpop.f32.mrf.mxu1 }
 0x43a   : > { %v2608_v59 = vmul.f32 -1.442695, %v1506_v55  ;;  %v1507_v51 = vadd.f32 %v1456_v54, %v4272_v40  ;;  %v2610_v32 = vmul.f32 -1.442695, %v1508_v5  ;;  %v1509_v44 = vadd.f32 %v1499_v49, %v4277_v7  ;;  %v4278_v55 = vld [vmem:[#allocation32_spill] sm:$0xff] }
 0x43b   : > { %v1458_v46 = vpop.f32.mrf.mxu0  ;;  %v1501_v45 = vpop.f32.mrf.mxu1 }
 0x43c   : > { %2925 = vpow2.f32 %v2608_v59  ;;  %v2609_v50 = vmul.f32 -1.442695, %v1507_v51  ;;  %v1510_v63 = vadd.f32 %v1458_v46, %v4273_v53  ;;  %v1512_v56 = vadd.f32 %v1501_v45, %v4276_v43 }
 0x43d   : > { %v1460_v6 = vpop.f32.mrf.mxu0  ;;  %v1503_v48 = vpop.f32.mrf.mxu1 }
 0x43e   : > { %2927 = vpow2.f32 %v2609_v50  ;;  %v2611_v58 = vmul.f32 -1.442695, %v1510_v63  ;;  %v1511_v2 = vadd.f32 %v1460_v6, %v4274_v0  ;;  %v2613_v10 = vmul.f32 -1.442695, %v1512_v56 }
 0x43f   : > { %v1513_v54 = vadd.f32 %v1503_v48, %v4278_v55  ;;  %v4279_v55 = vld [vmem:[#allocation33_spill] sm:$0xff] }
 0x440   : > { %2929 = vpow2.f32 %v2611_v58  ;;  %v2612_v62 = vmul.f32 -1.442695, %v1511_v2 }
 0x442   : > { %2931 = vpow2.f32 %v2612_v62 }
 0x443   : > { %2933 = vpow2.f32 %v2610_v32 }
 0x444   : > { %2935 = vtanh.f32 %v1509_v44 }
 0x449   : > { %v2926_v47 = vpop.eup %2925 }
 0x44a   : > { %v1532_v61 = vadd.f32 1.0, %v2926_v47 }
 0x44b   : > { %v2928_v4 = vpop.eup %2927 }
 0x44c   : > { %2937 = vrcp.f32 %v1532_v61  ;;  %v1533_v59 = vadd.f32 1.0, %v2928_v4 }
 0x44d   : > { %v2930_v40 = vpop.eup %2929  ;;  %2939 = vpow2.f32 %v2613_v10 }
 0x44e   : > { %2941 = vrcp.f32 %v1533_v59  ;;  %v1535_v23 = vadd.f32 1.0, %v2930_v40 }
 0x44f   : > { %v2932_v51 = vpop.eup %2931  ;;  %2943 = vtanh.f32 %v1513_v54 }
 0x450   : > { %2945 = vrcp.f32 %v1535_v23  ;;  %v1536_v46 = vadd.f32 1.0, %v2932_v51  ;;  %v2934_v50 = vpop.eup %2933  ;;  %v4280_v51 = vld [vmem:[#allocation35_spill] sm:$0xff] }
 0x451   : > { %v2936_v53 = vpop.eup %2935  ;;  %v1534_v14 = vadd.f32 1.0, %v2934_v50 }
 0x452   : > { %2947 = vrcp.f32 %v1536_v46 }
 0x453   : > { %2949 = vrcp.f32 %v1534_v14 }
 0x459   : > { %v2938_v63 = vpop.eup %2937 }
 0x45a   : > { %v2940_v6 = vpop.eup %2939  ;;  %v1554_v49 = vmul.f32 %v2938_v63, %v2936_v53  ;;  %v4281_v63 = vld [vmem:[#allocation37_spill] sm:$0xff] }
 0x45b   : > { %v2942_v58 = vpop.eup %2941  ;;  %v1537_v56 = vadd.f32 1.0, %v2940_v6 }
 0x45c   : > { %v2944_v0 = vpop.eup %2943  ;;  %v1552_v2 = vmul.f32 %v2942_v58, %v3849_v12 }
 0x45d   : > { %v2946_v62 = vpop.eup %2945 }
 0x45e   : > { %v3959_v5 = vadd.f32 %v1554_v49, %v1552_v2  ;;  %v1555_v45 = vmul.f32 %v2946_v62, %v2944_v0  ;;  %v4282_v2 = vld [vmem:[#allocation39_spill] sm:$0xff] }
 0x45f   : > { %v2948_v43 = vpop.eup %2947 }
 0x460   : > { %v1553_v32 = vmul.f32 %v2948_v43, %v3853_v60  ;;  %2951 = vtanh.f32 %v3959_v5  ;;  %v2950_v44 = vpop.eup %2949 }
 0x461   : > { %2953 = vrcp.f32 %v1537_v56 }
 0x462   : > { %v3963_v7 = vadd.f32 %v1555_v45, %v1553_v32  ;;  %v4283_v45 = vld [vmem:[#allocation34_spill] sm:$0xff] }
 0x463   : > { %v4284_v32 = vld [vmem:[#allocation38_spill] sm:$0xff] }
 0x464   : > { %2955 = vtanh.f32 %v3963_v7 }
 0x46d   : > { %v2952_v48 = vpop.eup %2951 }
 0x46e   : > { %v2954_v12 = vpop.eup %2953  ;;  %v1560_v10 = vmul.f32 %v2952_v48, %v2950_v44 }
 0x471   : > { %v2956_v47 = vpop.eup %2955 }
 0x472   : > { %v1561_v61 = vmul.f32 %v2956_v47, %v2954_v12  ;;  %v4285_v12 = vld [vmem:[#allocation36_spill] sm:$0xff] }
 0x474   : > { %v1573_v4 = vpack.c.bf16 %v1561_v61, %v1560_v10 }
 0x476   : > { %1607 = vmatmul.mubr.bf16.vlgmr.msra.gmra.mxu0 %v1573_v4  ;;  %1650 = vmatmul.mubr.bf16.vlgmr.msra.gmra.mxu1 %v1573_v4 }
 0x477   : > { %1729 = vmatpush1.bf16.msra.mxu0 %v3856_v11  ;;  %1772 = vmatpush1.bf16.msra.mxu1 %v3859_v3 }
 0x478   : > { %1730 = vmatprep.subr.bf16.mxu0 %v3862_v13  ;;  %1773 = vmatprep.subr.bf16.mxu1 %v3865_v15 }
 0x479   : > { %1760 = vmatprep.mubr.bf16.mxu0 %v4259_v1  ;;  %1803 = vmatprep.mubr.bf16.mxu1 %v4259_v1 }
 0x47b   : > { %1731 = vmatpush1.bf16.msra.mxu0 %v3870_v16  ;;  %1774 = vmatpush1.bf16.msra.mxu1 %v3873_v17 }
 0x47c   : > { %1732 = vmatprep.subr.bf16.mxu0 %v3876_v18  ;;  %1775 = vmatprep.subr.bf16.mxu1 %v3879_v19 }
 0x47f   : > { %1733 = vmatpush1.bf16.msra.mxu0 %v3882_v20  ;;  %1776 = vmatpush1.bf16.msra.mxu1 %v3885_v21 }
 0x480   : > { %1734 = vmatprep.subr.bf16.mxu0 %v3888_v22  ;;  %1777 = vmatprep.subr.bf16.mxu1 %v3891_v24 }
 0x483   : > { %1735 = vmatpush1.bf16.msra.mxu0 %v3894_v25  ;;  %1778 = vmatpush1.bf16.msra.mxu1 %v3897_v26 }
 0x484   : > { %1736 = vmatprep.subr.bf16.mxu0 %v3900_v27  ;;  %1779 = vmatprep.subr.bf16.mxu1 %v3903_v28 }
 0x487   : > { %1737 = vmatpush1.bf16.msra.mxu0 %v3906_v29  ;;  %1780 = vmatpush1.bf16.msra.mxu1 %v3909_v30 }
 0x488   : > { %1738 = vmatprep.subr.bf16.mxu0 %v3912_v31  ;;  %1781 = vmatprep.subr.bf16.mxu1 %v3915_v33 }
 0x48b   : > { %1739 = vmatpush1.bf16.msra.mxu0 %v3918_v34  ;;  %1782 = vmatpush1.bf16.msra.mxu1 %v3921_v35 }
 0x48c   : > { %1740 = vmatprep.subr.bf16.mxu0 %v3924_v36  ;;  %1783 = vmatprep.subr.bf16.mxu1 %v3927_v37 }
 0x48f   : > { %1741 = vmatpush1.bf16.msra.mxu0 %v3930_v38  ;;  %1784 = vmatpush1.bf16.msra.mxu1 %v3933_v39 }
 0x490   : > { %1742 = vmatprep.subr.bf16.mxu0 %v3936_v41  ;;  %1785 = vmatprep.subr.bf16.mxu1 %v3939_v42 }
 0x493   : > { %1743 = vmatpush1.bf16.msra.mxu0 %v3942_v57  ;;  %1786 = vmatpush1.bf16.msra.mxu1 %v3945_v52 }
 0x494   : > { %1882 = vmatprep.subr.bf16.mxu0 %v3834_v8  ;;  %1925 = vmatprep.subr.bf16.mxu1 %v3837_v9 }
 0x536   : > { %v1608_v60 = vpop.f32.mrf.mxu0  ;;  %v1651_v23 = vpop.f32.mrf.mxu1 }
 0x537   : > { %v1660_v54 = vadd.f32 %v1608_v60, %v4279_v55  ;;  %v1662_v43 = vadd.f32 %v1651_v23, %v4283_v45 }
 0x538   : > { %v1610_v59 = vpop.f32.mrf.mxu0  ;;  %v1653_v58 = vpop.f32.mrf.mxu1 }
 0x539   : > { %v2614_v40 = vmul.f32 -1.442695, %v1660_v54  ;;  %v1661_v46 = vadd.f32 %v1610_v59, %v4280_v51  ;;  %v2616_v48 = vmul.f32 -1.442695, %v1662_v43  ;;  %v1663_v47 = vadd.f32 %v1653_v58, %v4285_v12  ;;  %v4286_v54 = vld [vmem:[#allocation40_spill] sm:$0xff] }
 0x53a   : > { %v1612_v50 = vpop.f32.mrf.mxu0  ;;  %v1655_v56 = vpop.f32.mrf.mxu1 }
 0x53b   : > { %2957 = vpow2.f32 %v2614_v40  ;;  %v2615_v53 = vmul.f32 -1.442695, %v1661_v46  ;;  %v1664_v6 = vadd.f32 %v1612_v50, %v4281_v63  ;;  %v1666_v44 = vadd.f32 %v1655_v56, %v4284_v32 }
 0x53c   : > { %v1614_v49 = vpop.f32.mrf.mxu0  ;;  %v1657_v10 = vpop.f32.mrf.mxu1 }
 0x53d   : > { %2959 = vpow2.f32 %v2615_v53  ;;  %v2617_v0 = vmul.f32 -1.442695, %v1664_v6  ;;  %v1665_v62 = vadd.f32 %v1614_v49, %v4282_v2  ;;  %v2619_v4 = vmul.f32 -1.442695, %v1666_v44 }
 0x53e   : > { %v1667_v59 = vadd.f32 %v1657_v10, %v4286_v54  ;;  %v4287_v54 = vld [vmem:[#allocation41_spill] sm:$0xff] }
 0x53f   : > { %2961 = vpow2.f32 %v2617_v0  ;;  %v2618_v14 = vmul.f32 -1.442695, %v1665_v62 }
 0x541   : > { %2963 = vpow2.f32 %v2618_v14 }
 0x542   : > { %2965 = vpow2.f32 %v2616_v48 }
 0x543   : > { %2967 = vtanh.f32 %v1663_v47 }
 0x548   : > { %v2958_v61 = vpop.eup %2957 }
 0x549   : > { %v1686_v60 = vadd.f32 1.0, %v2958_v61 }
 0x54a   : > { %v2960_v55 = vpop.eup %2959 }
 0x54b   : > { %2969 = vrcp.f32 %v1686_v60  ;;  %v1687_v40 = vadd.f32 1.0, %v2960_v55 }
 0x54c   : > { %v2962_v51 = vpop.eup %2961  ;;  %2971 = vpow2.f32 %v2619_v4 }
 0x54d   : > { %2973 = vrcp.f32 %v1687_v40  ;;  %v1689_v23 = vadd.f32 1.0, %v2962_v51 }
 0x54e   : > { %v2964_v46 = vpop.eup %2963  ;;  %2975 = vtanh.f32 %v1667_v59 }
 0x54f   : > { %2977 = vrcp.f32 %v1689_v23  ;;  %v1690_v50 = vadd.f32 1.0, %v2964_v46  ;;  %v2966_v53 = vpop.eup %2965  ;;  %v4288_v46 = vld [vmem:[#allocation43_spill] sm:$0xff] }
 0x550   : > { %v2968_v63 = vpop.eup %2967  ;;  %v1688_v45 = vadd.f32 1.0, %v2966_v53 }
 0x551   : > { %2979 = vrcp.f32 %v1690_v50 }
 0x552   : > { %2981 = vrcp.f32 %v1688_v45 }
 0x558   : > { %v2970_v6 = vpop.eup %2969 }
 0x559   : > { %v2972_v49 = vpop.eup %2971  ;;  %v1708_v58 = vmul.f32 %v2970_v6, %v2968_v63  ;;  %v4289_v6 = vld [vmem:[#allocation45_spill] sm:$0xff] }
 0x55a   : > { %v2974_v0 = vpop.eup %2973  ;;  %v1691_v44 = vadd.f32 1.0, %v2972_v49 }
 0x55b   : > { %v2976_v2 = vpop.eup %2975  ;;  %v1706_v62 = vmul.f32 %v2974_v0, %v3959_v5 }
 0x55c   : > { %v2978_v14 = vpop.eup %2977 }
 0x55d   : > { %v4009_v43 = vadd.f32 %v1708_v58, %v1706_v62  ;;  %v1709_v56 = vmul.f32 %v2978_v14, %v2976_v2  ;;  %v4291_v14 = vld [vmem:[#allocation42_spill] sm:$0xff] }
 0x55e   : > { %v2980_v32 = vpop.eup %2979 }
 0x55f   : > { %v1707_v48 = vmul.f32 %v2980_v32, %v3963_v7  ;;  %2983 = vtanh.f32 %v4009_v43  ;;  %v2982_v47 = vpop.eup %2981  ;;  %v4292_v32 = vld [vmem:[#allocation46_spill] sm:$0xff] }
 0x560   : > { %2985 = vrcp.f32 %v1691_v44 }
 0x561   : > { %v4013_v12 = vadd.f32 %v1709_v56, %v1707_v48 }
 0x563   : > { %2987 = vtanh.f32 %v4013_v12 }
 0x56c   : > { %v2984_v10 = vpop.eup %2983 }
 0x56d   : > { %v2986_v5 = vpop.eup %2985  ;;  %v1714_v4 = vmul.f32 %v2984_v10, %v2982_v47  ;;  %v4293_v47 = vld [vmem:[#allocation44_spill] sm:$0xff] }
 0x570   : > { %v2988_v61 = vpop.eup %2987 }
 0x571   : > { %v1715_v60 = vmul.f32 %v2988_v61, %v2986_v5 }
 0x573   : > { %v1727_v55 = vpack.c.bf16 %v1715_v60, %v1714_v4 }
 0x575   : > { %1761 = vmatmul.mubr.bf16.vlgmr.msra.gmra.mxu0 %v1727_v55  ;;  %1804 = vmatmul.mubr.bf16.vlgmr.msra.gmra.mxu1 %v1727_v55 }
 0x576   : > { %1883 = vmatpush1.bf16.msra.mxu0 %v3856_v11  ;;  %1926 = vmatpush1.bf16.msra.mxu1 %v3859_v3 }
 0x577   : > { %1884 = vmatprep.subr.bf16.mxu0 %v3862_v13  ;;  %1927 = vmatprep.subr.bf16.mxu1 %v3865_v15 }
 0x578   : > { %1914 = vmatprep.mubr.bf16.mxu0 %v4259_v1  ;;  %1957 = vmatprep.mubr.bf16.mxu1 %v4259_v1 }
 0x57a   : > { %1885 = vmatpush1.bf16.msra.mxu0 %v3870_v16  ;;  %1928 = vmatpush1.bf16.msra.mxu1 %v3873_v17 }
 0x57b   : > { %1886 = vmatprep.subr.bf16.mxu0 %v3876_v18  ;;  %1929 = vmatprep.subr.bf16.mxu1 %v3879_v19 }
 0x57e   : > { %1887 = vmatpush1.bf16.msra.mxu0 %v3882_v20  ;;  %1930 = vmatpush1.bf16.msra.mxu1 %v3885_v21 }
 0x57f   : > { %1888 = vmatprep.subr.bf16.mxu0 %v3888_v22  ;;  %1931 = vmatprep.subr.bf16.mxu1 %v3891_v24 }
 0x582   : > { %1889 = vmatpush1.bf16.msra.mxu0 %v3894_v25  ;;  %1932 = vmatpush1.bf16.msra.mxu1 %v3897_v26 }
 0x583   : > { %1890 = vmatprep.subr.bf16.mxu0 %v3900_v27  ;;  %1933 = vmatprep.subr.bf16.mxu1 %v3903_v28 }
 0x586   : > { %1891 = vmatpush1.bf16.msra.mxu0 %v3906_v29  ;;  %1934 = vmatpush1.bf16.msra.mxu1 %v3909_v30 }
 0x587   : > { %1892 = vmatprep.subr.bf16.mxu0 %v3912_v31  ;;  %1935 = vmatprep.subr.bf16.mxu1 %v3915_v33 }
 0x58a   : > { %1893 = vmatpush1.bf16.msra.mxu0 %v3918_v34  ;;  %1936 = vmatpush1.bf16.msra.mxu1 %v3921_v35 }
 0x58b   : > { %1894 = vmatprep.subr.bf16.mxu0 %v3924_v36  ;;  %1937 = vmatprep.subr.bf16.mxu1 %v3927_v37 }
 0x58e   : > { %1895 = vmatpush1.bf16.msra.mxu0 %v3930_v38  ;;  %1938 = vmatpush1.bf16.msra.mxu1 %v3933_v39 }
 0x58f   : > { %1896 = vmatprep.subr.bf16.mxu0 %v3936_v41  ;;  %1939 = vmatprep.subr.bf16.mxu1 %v3939_v42 }
 0x592   : > { %1897 = vmatpush1.bf16.msra.mxu0 %v3942_v57  ;;  %1940 = vmatpush1.bf16.msra.mxu1 %v3945_v52 }
 0x593   : > { %2036 = vmatprep.subr.bf16.mxu0 %v3834_v8  ;;  %2079 = vmatprep.subr.bf16.mxu1 %v3837_v9  ;;  %v4290_v8 = vld [vmem:[#allocation47_spill] sm:$0xff] }
 0x635   : > { %v1762_v7 = vpop.f32.mrf.mxu0  ;;  %v1805_v23 = vpop.f32.mrf.mxu1 }
 0x636   : > { %v1814_v59 = vadd.f32 %v1762_v7, %v4287_v54  ;;  %v1816_v45 = vadd.f32 %v1805_v23, %v4291_v14  ;;  %v4294_v7 = vld [vmem:[#allocation48_spill] sm:$0xff] }
 0x637   : > { %v1764_v40 = vpop.f32.mrf.mxu0  ;;  %v1807_v0 = vpop.f32.mrf.mxu1 }
 0x638   : > { %v2620_v51 = vmul.f32 -1.442695, %v1814_v59  ;;  %v1815_v50 = vadd.f32 %v1764_v40, %v4288_v46  ;;  %v2622_v48 = vmul.f32 -1.442695, %v1816_v45  ;;  %v1817_v10 = vadd.f32 %v1807_v0, %v4293_v47 }
 0x639   : > { %v1766_v53 = vpop.f32.mrf.mxu0  ;;  %v1809_v56 = vpop.f32.mrf.mxu1 }
 0x63a   : > { %2989 = vpow2.f32 %v2620_v51  ;;  %v2621_v63 = vmul.f32 -1.442695, %v1815_v50  ;;  %v1818_v49 = vadd.f32 %v1766_v53, %v4289_v6  ;;  %v1820_v44 = vadd.f32 %v1809_v56, %v4292_v32 }
 0x63b   : > { %v1768_v58 = vpop.f32.mrf.mxu0  ;;  %v1811_v5 = vpop.f32.mrf.mxu1 }
 0x63c   : > { %2991 = vpow2.f32 %v2621_v63  ;;  %v2623_v2 = vmul.f32 -1.442695, %v1818_v49  ;;  %v1819_v62 = vadd.f32 %v1768_v58, %v4290_v8  ;;  %v2625_v4 = vmul.f32 -1.442695, %v1820_v44 }
 0x63d   : > { %v1821_v54 = vadd.f32 %v1811_v5, %v4294_v7 }
 0x63e   : > { %2993 = vpow2.f32 %v2623_v2  ;;  %v2624_v9 = vmul.f32 -1.442695, %v1819_v62 }
 0x640   : > { %2995 = vpow2.f32 %v2624_v9 }
 0x641   : > { %2997 = vpow2.f32 %v2622_v48 }
 0x642   : > { %2999 = vtanh.f32 %v1817_v10 }
 0x647   : > { %v2990_v61 = vpop.eup %2989 }
 0x648   : > { %v1840_v60 = vadd.f32 1.0, %v2990_v61 }
 0x649   : > { %v2992_v55 = vpop.eup %2991 }
 0x64a   : > { %3001 = vrcp.f32 %v1840_v60  ;;  %v1841_v59 = vadd.f32 1.0, %v2992_v55 }
 0x64b   : > { %v2994_v40 = vpop.eup %2993  ;;  %3003 = vpow2.f32 %v2625_v4 }
 0x64c   : > { %3005 = vrcp.f32 %v1841_v59  ;;  %v1843_v51 = vadd.f32 1.0, %v2994_v40 }
 0x64d   : > { %v2996_v23 = vpop.eup %2995  ;;  %3007 = vtanh.f32 %v1821_v54 }
 0x64e   : > { %3009 = vrcp.f32 %v1843_v51  ;;  %v1844_v46 = vadd.f32 1.0, %v2996_v23  ;;  %v2998_v50 = vpop.eup %2997 }
 0x64f   : > { %v3000_v53 = vpop.eup %2999  ;;  %v1842_v62 = vadd.f32 1.0, %v2998_v50 }
 0x650   : > { %3011 = vrcp.f32 %v1844_v46 }
 0x651   : > { %3013 = vrcp.f32 %v1842_v62 }
 0x657   : > { %v3002_v63 = vpop.eup %3001 }
 0x658   : > { %v3004_v6 = vpop.eup %3003  ;;  %v1862_v49 = vmul.f32 %v3002_v63, %v3000_v53 }
 0x659   : > { %v3006_v58 = vpop.eup %3005  ;;  %v1845_v56 = vadd.f32 1.0, %v3004_v6 }
 0x65a   : > { %v3008_v0 = vpop.eup %3007  ;;  %v1860_v2 = vmul.f32 %v3006_v58, %v4009_v43 }
 0x65b   : > { %v3010_v8 = vpop.eup %3009 }
 0x65c   : > { %v4059_v9 = vadd.f32 %v1862_v49, %v1860_v2  ;;  %v1863_v14 = vmul.f32 %v3010_v8, %v3008_v0 }
 0x65d   : > { %v3012_v45 = vpop.eup %3011 }
 0x65e   : > { %v1861_v32 = vmul.f32 %v3012_v45, %v4013_v12  ;;  %3015 = vtanh.f32 %v4059_v9  ;;  %v3014_v48 = vpop.eup %3013  ;;  %v4302_v12 = vld [vmem:[#allocation56_spill] sm:$0xff] }
 0x65f   : > { %3017 = vrcp.f32 %v1845_v56 }
 0x660   : > { %v4063_v44 = vadd.f32 %v1863_v14, %v1861_v32 }
 0x662   : > { %3019 = vtanh.f32 %v4063_v44 }
 0x66b   : > { %v3016_v47 = vpop.eup %3015 }
 0x66c   : > { %v3018_v43 = vpop.eup %3017  ;;  %v1868_v5 = vmul.f32 %v3016_v47, %v3014_v48 }
 0x66f   : > { %v3020_v10 = vpop.eup %3019 }
 0x670   : > { %v1869_v61 = vmul.f32 %v3020_v10, %v3018_v43 }
 0x672   : > { %v1881_v4 = vpack.c.bf16 %v1869_v61, %v1868_v5 }
 0x674   : > { %1915 = vmatmul.mubr.bf16.vlgmr.msra.gmra.mxu0 %v1881_v4  ;;  %1958 = vmatmul.mubr.bf16.vlgmr.msra.gmra.mxu1 %v1881_v4  ;;  %v4303_v4 = vld [vmem:[#allocation57_spill] sm:$0xff] }
 0x675   : > { %2037 = vmatpush1.bf16.msra.mxu0 %v3856_v11  ;;  %2080 = vmatpush1.bf16.msra.mxu1 %v3859_v3  ;;  %v4295_v11 = vld [vmem:[#allocation49_spill] sm:$0xff] }
 0x676   : > { %2038 = vmatprep.subr.bf16.mxu0 %v3862_v13  ;;  %2081 = vmatprep.subr.bf16.mxu1 %v3865_v15 }
 0x677   : > { %2068 = vmatprep.mubr.bf16.mxu0 %v4259_v1  ;;  %2111 = vmatprep.mubr.bf16.mxu1 %v4259_v1 }
 0x679   : > { %2039 = vmatpush1.bf16.msra.mxu0 %v3870_v16  ;;  %2082 = vmatpush1.bf16.msra.mxu1 %v3873_v17  ;;  %v4296_v17 = vld [vmem:[#allocation51_spill] sm:$0xff] }
 0x67a   : > { %2040 = vmatprep.subr.bf16.mxu0 %v3876_v18  ;;  %2083 = vmatprep.subr.bf16.mxu1 %v3879_v19 }
 0x67d   : > { %2041 = vmatpush1.bf16.msra.mxu0 %v3882_v20  ;;  %2084 = vmatpush1.bf16.msra.mxu1 %v3885_v21  ;;  %v4297_v21 = vld [vmem:[#allocation53_spill] sm:$0xff] }
 0x67e   : > { %2042 = vmatprep.subr.bf16.mxu0 %v3888_v22  ;;  %2085 = vmatprep.subr.bf16.mxu1 %v3891_v24 }
 0x681   : > { %2043 = vmatpush1.bf16.msra.mxu0 %v3894_v25  ;;  %2086 = vmatpush1.bf16.msra.mxu1 %v3897_v26 }
 0x682   : > { %2044 = vmatprep.subr.bf16.mxu0 %v3900_v27  ;;  %2087 = vmatprep.subr.bf16.mxu1 %v3903_v28  ;;  %v4298_v27 = vld [vmem:[#allocation55_spill] sm:$0xff] }
 0x685   : > { %2045 = vmatpush1.bf16.msra.mxu0 %v3906_v29  ;;  %2088 = vmatpush1.bf16.msra.mxu1 %v3909_v30  ;;  %v4299_v30 = vld [vmem:[#allocation50_spill] sm:$0xff] }
 0x686   : > { %2046 = vmatprep.subr.bf16.mxu0 %v3912_v31  ;;  %2089 = vmatprep.subr.bf16.mxu1 %v3915_v33 }
 0x689   : > { %2047 = vmatpush1.bf16.msra.mxu0 %v3918_v34  ;;  %2090 = vmatpush1.bf16.msra.mxu1 %v3921_v35  ;;  %v4300_v34 = vld [vmem:[#allocation54_spill] sm:$0xff] }
 0x68a   : > { %2048 = vmatprep.subr.bf16.mxu0 %v3924_v36  ;;  %2091 = vmatprep.subr.bf16.mxu1 %v3927_v37  ;;  %v4301_v37 = vld [vmem:[#allocation52_spill] sm:$0xff] }
 0x68d   : > { %2049 = vmatpush1.bf16.msra.mxu0 %v3930_v38  ;;  %2092 = vmatpush1.bf16.msra.mxu1 %v3933_v39 }
 0x68e   : > { %2050 = vmatprep.subr.bf16.mxu0 %v3936_v41  ;;  %2093 = vmatprep.subr.bf16.mxu1 %v3939_v42 }
 0x691   : > { %2051 = vmatpush1.bf16.msra.mxu0 %v3942_v57  ;;  %2094 = vmatpush1.bf16.msra.mxu1 %v3945_v52 }
 0x734   : > { %v1916_v1 = vpop.f32.mrf.mxu0  ;;  %v1959_v16 = vpop.f32.mrf.mxu1 }
 0x735   : > { %v1968_v3 = vadd.f32 %v1916_v1, %v4295_v11  ;;  %v1970_v31 = vadd.f32 %v1959_v16, %v4299_v30  ;;  %v4308_v30 = vld [vmem:[#allocation62_spill] sm:$0xff] }
 0x736   : > { %v1918_v13 = vpop.f32.mrf.mxu0  ;;  %v1961_v25 = vpop.f32.mrf.mxu1 }
 0x737   : > { %v2626_v15 = vmul.f32 -1.442695, %v1968_v3  ;;  %v1969_v18 = vadd.f32 %v1918_v13, %v4296_v17  ;;  %v2628_v36 = vmul.f32 -1.442695, %v1970_v31  ;;  %v1971_v38 = vadd.f32 %v1961_v25, %v4301_v37  ;;  %v4304_v13 = vld [vmem:[#allocation59_spill] sm:$0xff] }
 0x738   : > { %v1920_v19 = vpop.f32.mrf.mxu0  ;;  %v1963_v33 = vpop.f32.mrf.mxu1 }
 0x739   : > { %3021 = vpow2.f32 %v2626_v15  ;;  %v2627_v20 = vmul.f32 -1.442695, %v1969_v18  ;;  %v1972_v22 = vadd.f32 %v1920_v19, %v4297_v21  ;;  %v1974_v35 = vadd.f32 %v1963_v33, %v4300_v34  ;;  %v4305_v18 = vld [vmem:[#allocation61_spill] sm:$0xff]  ;;  %v4309_v34 = vld [vmem:[#allocation60_spill] sm:$0xff] }
 0x73a   : > { %v1922_v24 = vpop.f32.mrf.mxu0  ;;  %v1965_v39 = vpop.f32.mrf.mxu1 }
 0x73b   : > { %3023 = vpow2.f32 %v2627_v20  ;;  %v2629_v26 = vmul.f32 -1.442695, %v1972_v22  ;;  %v1973_v28 = vadd.f32 %v1922_v24, %v4298_v27  ;;  %v2631_v42 = vmul.f32 -1.442695, %v1974_v35  ;;  %v4306_v24 = vld [vmem:[#allocation63_spill] sm:$0xff]  ;;  %v4307_v27 = vld [vmem:[#allocation58_spill] sm:$0xff] }
 0x73c   : > { %v1975_v60 = vadd.f32 %v1965_v39, %v4302_v12 }
 0x73d   : > { %3025 = vpow2.f32 %v2629_v26  ;;  %v2630_v29 = vmul.f32 -1.442695, %v1973_v28 }
 0x73f   : > { %3027 = vpow2.f32 %v2630_v29 }
 0x740   : > { %3029 = vpow2.f32 %v2628_v36 }
 0x741   : > { %3031 = vtanh.f32 %v1971_v38 }
 0x746   : > { %v3022_v41 = vpop.eup %3021 }
 0x747   : > { %v1994_v57 = vadd.f32 1.0, %v3022_v41 }
 0x748   : > { %v3024_v52 = vpop.eup %3023 }
 0x749   : > { %3033 = vrcp.f32 %v1994_v57  ;;  %v1995_v55 = vadd.f32 1.0, %v3024_v52 }
 0x74a   : > { %v3026_v7 = vpop.eup %3025  ;;  %3035 = vpow2.f32 %v2631_v42  ;;  %v4310_v42 = vld [vmem:[#allocation64_spill] sm:$0xff] }
 0x74b   : > { %3037 = vrcp.f32 %v1995_v55  ;;  %v1997_v54 = vadd.f32 1.0, %v3026_v7 }
 0x74c   : > { %v3028_v59 = vpop.eup %3027  ;;  %3039 = vtanh.f32 %v1975_v60 }
 0x74d   : > { %3041 = vrcp.f32 %v1997_v54  ;;  %v1998_v40 = vadd.f32 1.0, %v3028_v59  ;;  %v3030_v51 = vpop.eup %3029 }
 0x74e   : > { %v3032_v23 = vpop.eup %3031  ;;  %v1996_v0 = vadd.f32 1.0, %v3030_v51 }
 0x74f   : > { %3043 = vrcp.f32 %v1998_v40 }
 0x750   : > { %3045 = vrcp.f32 %v1996_v0 }
 0x756   : > { %v3034_v46 = vpop.eup %3033 }
 0x757   : > { %v3036_v50 = vpop.eup %3035  ;;  %v2016_v53 = vmul.f32 %v3034_v46, %v3032_v23 }
 0x758   : > { %v3038_v63 = vpop.eup %3037  ;;  %v1999_v14 = vadd.f32 1.0, %v3036_v50 }
 0x759   : > { %v3040_v6 = vpop.eup %3039  ;;  %v2014_v49 = vmul.f32 %v3038_v63, %v4059_v9 }
 0x75a   : > { %v3042_v58 = vpop.eup %3041 }
 0x75b   : > { %v4107_v2 = vadd.f32 %v2016_v53, %v2014_v49  ;;  %v2017_v8 = vmul.f32 %v3042_v58, %v3040_v6 }
 0x75c   : > { %v3044_v62 = vpop.eup %3043 }
 0x75d   : > { %v2015_v45 = vmul.f32 %v3044_v62, %v4063_v44  ;;  %3047 = vtanh.f32 %v4107_v2  ;;  %v3046_v32 = vpop.eup %3045 }
 0x75e   : > { %3049 = vrcp.f32 %v1999_v14 }
 0x75f   : > { %v4111_v56 = vadd.f32 %v2017_v8, %v2015_v45 }
 0x761   : > { %3051 = vtanh.f32 %v4111_v56 }
 0x76a   : > { %v3048_v48 = vpop.eup %3047 }
 0x76b   : > { %v3050_v9 = vpop.eup %3049  ;;  %v2022_v43 = vmul.f32 %v3048_v48, %v3046_v32 }
 0x76e   : > { %v3052_v47 = vpop.eup %3051 }
 0x76f   : > { %v2023_v10 = vmul.f32 %v3052_v47, %v3050_v9 }
 0x771   : > { %v2035_v5 = vpack.c.bf16 %v2023_v10, %v2022_v43 }
 0x773   : > { %2069 = vmatmul.mubr.bf16.vlgmr.msra.gmra.mxu0 %v2035_v5  ;;  %2112 = vmatmul.mubr.bf16.vlgmr.msra.gmra.mxu1 %v2035_v5 }
 0x833   : > { %v2070_v61 = vpop.f32.mrf.mxu0  ;;  %v2113_v3 = vpop.f32.mrf.mxu1 }
 0x834   : > { %v2122_v44 = vadd.f32 %v2070_v61, %v4303_v4  ;;  %v2124_v28 = vadd.f32 %v2113_v3, %v4307_v27 }
 0x835   : > { %v2072_v1 = vpop.f32.mrf.mxu0  ;;  %v2115_v21 = vpop.f32.mrf.mxu1 }
 0x836   : > { %v2632_v11 = vmul.f32 -1.442695, %v2122_v44  ;;  %v2123_v15 = vadd.f32 %v2072_v1, %v4304_v13  ;;  %v2634_v33 = vmul.f32 -1.442695, %v2124_v28  ;;  %v2125_v35 = vadd.f32 %v2115_v21, %v4309_v34 }
 0x837   : > { %v2074_v16 = vpop.f32.mrf.mxu0  ;;  %v2117_v29 = vpop.f32.mrf.mxu1 }
 0x838   : > { %3053 = vpow2.f32 %v2632_v11  ;;  %v2633_v17 = vmul.f32 -1.442695, %v2123_v15  ;;  %v2126_v19 = vadd.f32 %v2074_v16, %v4305_v18  ;;  %v2128_v31 = vadd.f32 %v2117_v29, %v4308_v30 }
 0x839   : > { %v2076_v20 = vpop.f32.mrf.mxu0  ;;  %v2119_v36 = vpop.f32.mrf.mxu1 }
 0x83a   : > { %3055 = vpow2.f32 %v2633_v17  ;;  %v2635_v22 = vmul.f32 -1.442695, %v2126_v19  ;;  %v2127_v25 = vadd.f32 %v2076_v20, %v4306_v24  ;;  %v2637_v38 = vmul.f32 -1.442695, %v2128_v31 }
 0x83b   : > { %v2129_v57 = vadd.f32 %v2119_v36, %v4310_v42 }
 0x83c   : > { %3057 = vpow2.f32 %v2635_v22  ;;  %v2636_v26 = vmul.f32 -1.442695, %v2127_v25 }
 0x83e   : > { %3059 = vpow2.f32 %v2636_v26 }
 0x83f   : > { %3061 = vpow2.f32 %v2634_v33 }
 0x840   : > { %3063 = vtanh.f32 %v2125_v35 }
 0x845   : > { %v3054_v37 = vpop.eup %3053 }
 0x846   : > { %v2148_v39 = vadd.f32 1.0, %v3054_v37 }
 0x847   : > { %v3056_v41 = vpop.eup %3055 }
 0x848   : > { %3065 = vrcp.f32 %v2148_v39  ;;  %v2149_v52 = vadd.f32 1.0, %v3056_v41 }
 0x849   : > { %v3058_v12 = vpop.eup %3057  ;;  %3067 = vpow2.f32 %v2637_v38 }
 0x84a   : > { %3069 = vrcp.f32 %v2149_v52  ;;  %v2151_v60 = vadd.f32 1.0, %v3058_v12 }
 0x84b   : > { %v3060_v55 = vpop.eup %3059  ;;  %3071 = vtanh.f32 %v2129_v57 }
 0x84c   : > { %3073 = vrcp.f32 %v2151_v60  ;;  %v2152_v7 = vadd.f32 1.0, %v3060_v55  ;;  %v3062_v54 = vpop.eup %3061 }
 0x84d   : > { %v3064_v59 = vpop.eup %3063  ;;  %v2150_v50 = vadd.f32 1.0, %v3062_v54 }
 0x84e   : > { %3075 = vrcp.f32 %v2152_v7 }
 0x84f   : > { %3077 = vrcp.f32 %v2150_v50 }
 0x855   : > { %v3066_v40 = vpop.eup %3065 }
 0x856   : > { %v3068_v51 = vpop.eup %3067  ;;  %v2170_v23 = vmul.f32 %v3066_v40, %v3064_v59 }
 0x857   : > { %v3070_v46 = vpop.eup %3069  ;;  %v2153_v8 = vadd.f32 1.0, %v3068_v51 }
 0x858   : > { %v3072_v53 = vpop.eup %3071  ;;  %v2168_v63 = vmul.f32 %v3070_v46, %v4107_v2 }
 0x859   : > { %v3074_v6 = vpop.eup %3073 }
 0x85a   : > { %v2172_v49 = vadd.f32 %v2170_v23, %v2168_v63  ;;  %v2171_v58 = vmul.f32 %v3074_v6, %v3072_v53 }
 0x85b   : > { %v3076_v0 = vpop.eup %3075 }
 0x85c   : > { %3079 = vtanh.f32 %v2172_v49  ;;  %2180 = vst [vmem:[#allocation4 + $0x8] sm:$0xff] %v2172_v49  ;;  %v2169_v62 = vmul.f32 %v3076_v0, %v4111_v56  ;;  %v3078_v45 = vpop.eup %3077 }
 0x85d   : > { %3081 = vrcp.f32 %v2153_v8 }
 0x85e   : > { %v2173_v14 = vadd.f32 %v2171_v58, %v2169_v62 }
 0x860   : > { %3083 = vtanh.f32 %v2173_v14  ;;  %2181 = vst [vmem:[#allocation4] sm:$0xff] %v2173_v14 }
 0x869   : > { %v3080_v32 = vpop.eup %3079 }
 0x86a   : > { %v2176_v48 = vmul.f32 %v3080_v32, %v3078_v45  ;;  %v3082_v9 = vpop.eup %3081 }
 0x86c   : > { %2178 = vst [vmem:[#allocation3] sm:$0xff] %v2176_v48  ;;  %2185 = sbr.rel (%p2638_p4) target bundleno = 2663 (0xa67), region = 68 }
 0x86d   : > { %v3084_v2 = vpop.eup %3083 }
 0x86e   : > { %v2177_v47 = vmul.f32 %v3084_v2, %v3082_v9 }
 0x870   : > { %2179 = vst [vmem:[#allocation3 + $0x8] sm:$0xff] %v2177_v47 }
 0x871   : > { %v3117_v43 = vld [vmem:[%s4198_s4 + $0x38] sm:$0xff]   ;;  %v3251_v56 = vmov 0.0   ;;  %v3118_v10 = vld [vmem:[%s4198_s4 + $0x30] sm:$0xff]   ;;  %vm3252_vm1 = vmmov 0   ;;  %v3119_v5 = vld [vmem:[%s4198_s4 + $0x28] sm:$0xff]   ;;  %v2186_v3 = vpack.c.bf16 %v2177_v47, %v2176_v48 }
 0x872   : > { %2683 = vmatprep.subr.bf16.mxu0 %v3251_v56  ;;  %2703 = vmatprep.subr.bf16.mxu1 %v3251_v56  ;;  %v3120_v61 = vld [vmem:[%s4198_s4 + $0x20] sm:$0xff]   ;;  %v3121_v4 = vld [vmem:[%s4198_s4 + $0x18] sm:$0xff]   ;;  %v3122_v44 = vld [vmem:[%s4198_s4 + $0x10] sm:$0xff]  }
 0x873   : > { %2684 = vmatpush3.bf16.msra.mxu0 %v3117_v43  ;;  %2699 = vmatprep.mubr.msk.bf16.mxu0 %vm3252_vm1, %v3251_v56  ;;  %v3123_v1 = vld [vmem:[%s4198_s4 + $0x8] sm:$0xff]   ;;  %v3124_v11 = vld [vmem:[%s4198_s4] sm:$0xff]   ;;  %v3125_v13 = vld [vmem:[%s4200_s6 + $0x38] sm:$0xff]  }
 0x874   : > { %2685 = vmatprep.subr.bf16.mxu0 %v3251_v56  ;;  %2719 = vmatprep.mubr.msk.bf16.mxu1 %vm3252_vm1, %v3251_v56  ;;  %v3126_v15 = vld [vmem:[%s4200_s6 + $0x30] sm:$0xff]   ;;  %v3127_v16 = vld [vmem:[%s4200_s6 + $0x28] sm:$0xff]   ;;  %v3128_v17 = vld [vmem:[%s4200_s6 + $0x20] sm:$0xff]  }
 0x875   : > { %2704 = vmatpush3.bf16.msra.mxu1 %v3125_v13  ;;  %v3129_v18 = vld [vmem:[%s4200_s6 + $0x18] sm:$0xff]   ;;  %v3130_v19 = vld [vmem:[%s4200_s6 + $0x10] sm:$0xff]   ;;  %v3131_v20 = vld [vmem:[%s4200_s6 + $0x8] sm:$0xff]  }
 0x876   : > { %2705 = vmatprep.subr.bf16.mxu1 %v3251_v56  ;;  %v3132_v21 = vld [vmem:[%s4200_s6] sm:$0xff]  }
 0x877   : > { %2686 = vmatpush3.bf16.msra.mxu0 %v3118_v10  ;;  %v2639_v22 = vld [vmem:[%s4199_s5] ss:$0 sm:$0xff] }
 0x878   : > { %2687 = vmatprep.subr.bf16.mxu0 %v3251_v56  ;;  %v2650_v57 = vld [vmem:[%s4201_s7] ss:$0 sm:$0xff] }
 0x879   : > { %2706 = vmatpush3.bf16.msra.mxu1 %v3126_v15 }
 0x87a   : > { %2707 = vmatprep.subr.bf16.mxu1 %v3251_v56 }
 0x87b   : > { %2688 = vmatpush3.bf16.msra.mxu0 %v3119_v5 }
 0x87c   : > { %2689 = vmatprep.subr.bf16.mxu0 %v3251_v56 }
 0x87d   : > { %2708 = vmatpush3.bf16.msra.mxu1 %v3127_v16 }
 0x87e   : > { %2709 = vmatprep.subr.bf16.mxu1 %v3251_v56 }
 0x87f   : > { %2690 = vmatpush3.bf16.msra.mxu0 %v3120_v61 }
 0x880   : > { %2691 = vmatprep.subr.bf16.mxu0 %v3251_v56 }
 0x881   : > { %2710 = vmatpush3.bf16.msra.mxu1 %v3128_v17 }
 0x882   : > { %2711 = vmatprep.subr.bf16.mxu1 %v3251_v56 }
 0x883   : > { %2692 = vmatpush3.bf16.msra.mxu0 %v3121_v4 }
 0x884   : > { %2693 = vmatprep.subr.bf16.mxu0 %v3251_v56 }
 0x885   : > { %2712 = vmatpush3.bf16.msra.mxu1 %v3129_v18 }
 0x886   : > { %2713 = vmatprep.subr.bf16.mxu1 %v3251_v56 }
 0x887   : > { %2694 = vmatpush3.bf16.msra.mxu0 %v3122_v44 }
 0x888   : > { %2695 = vmatprep.subr.bf16.mxu0 %v3251_v56 }
 0x889   : > { %2714 = vmatpush3.bf16.msra.mxu1 %v3130_v19 }
 0x88a   : > { %2715 = vmatprep.subr.bf16.mxu1 %v3251_v56 }
 0x88b   : > { %2696 = vmatpush3.bf16.msra.mxu0 %v3123_v1 }
 0x88c   : > { %2697 = vmatprep.subr.bf16.mxu0 %v3251_v56 }
 0x88d   : > { %2716 = vmatpush3.bf16.msra.mxu1 %v3131_v20 }
 0x88e   : > { %2717 = vmatprep.subr.bf16.mxu1 %v3251_v56 }
 0x88f   : > { %2698 = vmatpush3.bf16.msra.mxu0 %v3124_v11 }
 0x891   : > { %2718 = vmatpush3.bf16.msra.mxu1 %v3132_v21 }
 0x892   : > { %2700 = vmatmul.mubr.bf16.vlgmr.msra.gmra.mxu0 %v2186_v3 }
 0x952   : > { %v2292_v24 = vpop.f32.mrf.mxu0 }
 0x953   : > { %v2293_v25 = vadd.f32 %v2639_v22, %v2292_v24 }
 0x954   : > { %v2701_v26 = vpop.f32.mrf.mxu0 }
 0x955   : > { %v2648_v27 = vmul.f32 -1.442695, %v2293_v25 }
 0x956   : > { %v2295_v28 = vpop.f32.mrf.mxu0 }
 0x957   : > { %3133 = vpow2.f32 %v2648_v27  ;;  %v2296_v29 = vadd.f32 %v2639_v22, %v2295_v28 }
 0x958   : > { %v2702_v30 = vpop.f32.mrf.mxu0 }
 0x959   : > { %v2649_v31 = vmul.f32 -1.442695, %v2296_v29 }
 0x95b   : > { %3135 = vpow2.f32 %v2649_v31 }
 0x964   : > { %v3134_v33 = vpop.eup %3133 }
 0x965   : > { %v2305_v34 = vadd.f32 1.0, %v3134_v33 }
 0x967   : > { %3137 = vrcp.f32 %v2305_v34 }
 0x968   : > { %v3136_v35 = vpop.eup %3135 }
 0x969   : > { %v2306_v36 = vadd.f32 1.0, %v3136_v35 }
 0x96b   : > { %3139 = vrcp.f32 %v2306_v36 }
 0x974   : > { %v3138_v37 = vpop.eup %3137 }
 0x975   : > { %v2311_v39 = vmul.f32 %v3138_v37, %v2293_v25 }
 0x978   : > { %v3140_v38 = vpop.eup %3139 }
 0x979   : > { %v2312_v41 = vmul.f32 %v3140_v38, %v2296_v29 }
 0x97b   : > { %v2313_v42 = vpack.c.bf16 %v2312_v41, %v2311_v39 }
 0x97d   : > { %2720 = vmatmul.mubr.bf16.vlgmr.msra.gmra.mxu1 %v2313_v42 }
 0xa3d   : > { %v2419_v52 = vpop.f32.mrf.mxu1 }
 0xa3e   : > { %v2420_v12 = vadd.f32 %v2650_v57, %v2419_v52 }
 0xa3f   : > { %v2721_v60 = vpop.f32.mrf.mxu1 }
 0xa40   : > { %v2659_v55 = vmul.f32 -1.442695, %v2420_v12 }
 0xa41   : > { %v2422_v7 = vpop.f32.mrf.mxu1 }
 0xa42   : > { %3141 = vpow2.f32 %v2659_v55  ;;  %v2423_v54 = vadd.f32 %v2650_v57, %v2422_v7 }
 0xa43   : > { %v2722_v59 = vpop.f32.mrf.mxu1 }
 0xa44   : > { %v2660_v40 = vmul.f32 -1.442695, %v2423_v54 }
 0xa46   : > { %3143 = vpow2.f32 %v2660_v40 }
 0xa4f   : > { %v3142_v51 = vpop.eup %3141 }
 0xa50   : > { %v2432_v23 = vadd.f32 1.0, %v3142_v51 }
 0xa52   : > { %3145 = vrcp.f32 %v2432_v23 }
 0xa53   : > { %v3144_v46 = vpop.eup %3143 }
 0xa54   : > { %v2433_v50 = vadd.f32 1.0, %v3144_v46 }
 0xa56   : > { %3147 = vrcp.f32 %v2433_v50 }
 0xa5f   : > { %v3146_v53 = vpop.eup %3145 }
 0xa60   : > { %v2438_v63 = vmul.f32 %v3146_v53, %v2420_v12 }
 0xa62   : > { %2440 = vst [vmem:[#allocation10] sm:$0xff] %v2438_v63 }
 0xa63   : > { %v3148_v6 = vpop.eup %3147 }
 0xa64   : > { %v2439_v49 = vmul.f32 %v3148_v6, %v2423_v54 }
 0xa66   : > { %2441 = vst [vmem:[#allocation10 + $0x8] sm:$0xff] %v2439_v49 }
 0xa67 PF: > { %p2746_p6 = scmp.eq.s32.totalorder %s3307_s28, 1  ;;  %s3253_s24 = smov [#allocation10]  }
 0xa68   : > { %s2448_s25 = sshll.u32 %s3253_s24, 4  ;;  %s2449_s25 = int_to_ptr.vmem [resolvable:$true] %s2448_s25 }
 0xa69   : > { %s3201_s26 = scalar_lea.vmem %s2449_s25, 256  ;;  %p3208_p0 = scmp.lt.s32.totalorder %s2449_s25, %s2449_s25 }
 0xa6a   : > { %p3202_p7 = scmp.ne.s32.totalorder %s2449_s25, %s3201_s26  ;;  %p3209_p1 = scmp.lt.s32.totalorder %s3201_s26, %s3201_s26 }
 0xa6c   : > { %p3203_p12 = pnand %p3202_p7, %p2746_p6  ;;  %p3210_p5 = por %p3209_p1, %p3208_p0 }
 0xa6e   : > { %p3204_p13 = pneg %p3203_p12 }
 0xa70   : > { %p3211_p8 = pnand %p3210_p5, %p3204_p13 }
 0xa72   : > { %3214 = shalt.err (!%p3211_p8)
}
 0xa73   : > { %s3254_s29 = smov 128   ;;  %s3255_s30 = smov 8  }
 0xa74   : > { %2732 = dma.vmem_to_hbm [thread:$0]  (%p2746_p6), %s2449_s25, 256, %s4202_s8, [#allocation7], %s3254_s29, %s3254_s29, %s3255_s30  }
 0xa75   : > { %3238 = dma.done.wait (%p2746_p6), [#allocation7], 256  }
 0xa76   : > { %3240 = vsyncadd (%p2746_p6), [#allocation7], 4294967040 }
 0xa77 PF: > { %s21_s27 = sadd.s32 1, %s3243_s27  }
 0xa78   : > { %p18_p9 = scmp.ge.s32.totalorder %s21_s27, 4  }
 0xa7a   :  { %20 = sbr.rel (!%p18_p9) target bundleno = 3 (0x3), region = 104 }
 0xa7f   :  { %2464 = vsyncpa [#allocation6], 1 }
 0xa80   :  { %2466 = vsyncpa [#allocation6 + $0x1], 1 }
 0xa81   :  { %2467 = vsyncpa [#allocation9], 1 }
 0xa82   :  { %2468 = vsyncpa [#allocation7], 1 }
 0xa83   :  { %2470 = vsyncpa [#allocation7 + $0x1], 1 }

</bundles_post_ra>
